<compile_context>
chip_gen: v6e
topology: v6e:2x2x1
jax: 0.10.0
libtpu: 0.0.40
codegen_flags: <defaults>
</compile_context>

<pallas_src>
import functools

import jax
import jax.numpy as jnp
from jax.experimental import pallas as pl
from jax.experimental.pallas import tpu as pltpu


def _layernorm(x, gamma, beta, eps):
    """LayerNorm over the last axis (f32), matching the PyTorch module."""
    mean = jnp.mean(x, axis=-1, keepdims=True)
    var = jnp.mean(jnp.square(x - mean), axis=-1, keepdims=True)
    return (x - mean) * jax.lax.rsqrt(var + eps) * gamma + beta


def _vmem_limit_bytes(want=112 * 1024 * 1024, default=64 * 1024 * 1024):
    """Raise Mosaic's 32 MiB scoped-VMEM default, clamped to the chip's VMEM."""
    try:
        cap = int(pltpu.get_tpu_info().vmem_capacity_bytes)
        return int(min(want, cap - 8 * 1024 * 1024))
    except Exception:  # pragma: no cover - conservative fallback
        return default


def _pick_tile(total, candidates):
    """Largest candidate tile that evenly divides `total` (else the full dim)."""
    for c in candidates:
        if c <= total and total % c == 0:
            return c
    return total


def _gpt_block_kernel(x_ref, mask_ref, g1_ref, b1_ref, wqkv_ref, wo_ref, bo_ref,
                      g2_ref, b2_ref, w1_ref, c1_ref, w2_ref, c2_ref,
                      o_ref, act_ref, ctx_ref,
                      *, num_heads, head_dim, seq_len, rows_per_chunk, eps):
    """One transformer block for one chunk of batch rows; activations resident
    in VMEM across the layer grid axis."""
    layer = pl.program_id(1)

    # Load the embedding activations into the resident scratch at layer 0.
    @pl.when(layer == 0)
    def _():
        act_ref[...] = x_ref[...].astype(jnp.float32)

    act = act_ref[...]                               # (rows, D) f32
    rows, D = act.shape
    H, hd, T = num_heads, head_dim, seq_len

    # ---- LayerNorm 1 (f32) ---------------------------------------------------
    xn = _layernorm(act, g1_ref[0], b1_ref[0], eps)  # (rows, D)

    # ---- fused QKV projection: ONE lane-dense matmul (rows, D) @ (D, 3D) -----
    # q columns are pre-scaled by 1/sqrt(hd) in the wrapper (zero kernel cost).
    qkv = jnp.dot(xn.astype(jnp.bfloat16), wqkv_ref[0],
                  preferred_element_type=jnp.float32)          # (rows, 3D)

    # ---- causal attention, per (batch row, head) ------------------------------
    # Static loops (rows_per_chunk and H are tiny compile-time constants); each
    # head's context is written into a disjoint lane slice of ctx_ref so the
    # output projection can be a single (rows, D) @ (D, D) matmul.
    mask = mask_ref[...]                              # (T, T) additive -inf/0
    for r in range(rows_per_chunk):
        base = r * T
        for h in range(H):
            qo = h * hd
            ko = D + h * hd
            vo = 2 * D + h * hd
            q_h = qkv[base:base + T, qo:qo + hd].astype(jnp.bfloat16)   # (T, hd)
            k_h = qkv[base:base + T, ko:ko + hd].astype(jnp.bfloat16)
            v_h = qkv[base:base + T, vo:vo + hd].astype(jnp.bfloat16)
            s = jax.lax.dot_general(q_h, k_h, (((1,), (1,)), ((), ())),
                                    preferred_element_type=jnp.float32)  # (T, T)
            s = s + mask
            m = jnp.max(s, axis=-1, keepdims=True)
            p = jnp.exp(s - m)
            p = p * pl.reciprocal(jnp.sum(p, axis=-1, keepdims=True), approx=True)
            # TODO(synk): attention-weight dropout is identity (p=0.0 / eval).
            ctx_ref[base:base + T, qo:qo + hd] = jnp.dot(
                p.astype(jnp.bfloat16), v_h, preferred_element_type=jnp.float32)

    # ---- output projection: single full-K matmul, no (H,T,D) intermediate ----
    attn_out = jnp.dot(ctx_ref[...].astype(jnp.bfloat16), wo_ref[0],
                       preferred_element_type=jnp.float32) + bo_ref[0]  # (rows,D)

    act = act + attn_out                              # residual 1

    # ---- LayerNorm 2 + FeedForward (tanh-approx GELU) ------------------------
    yn = _layernorm(act, g2_ref[0], b2_ref[0], eps)
    h1 = jnp.dot(yn.astype(jnp.bfloat16), w1_ref[0],
                 preferred_element_type=jnp.float32) + c1_ref[0]        # (rows,4D)
    c = 0.7978845608028654                            # sqrt(2/pi)
    gelu = 0.5 * h1 * (1.0 + jnp.tanh(c * (h1 + 0.044715 * h1 * h1 * h1)))
    h2 = jnp.dot(gelu.astype(jnp.bfloat16), w2_ref[0],
                 preferred_element_type=jnp.float32) + c2_ref[0]        # (rows,D)

    act_ref[...] = act + h2                           # residual 2

    # Write the block stack's output once, after the last layer.
    @pl.when(layer == pl.num_programs(1) - 1)
    def _():
        o_ref[...] = act_ref[...].astype(o_ref.dtype)


def _final_head_kernel(x_ref, g_ref, b_ref, wh_ref, o_ref, *, eps):
    """Final LayerNorm + vocab head on a (row tile, vocab tile) block."""
    xn = _layernorm(x_ref[...].astype(jnp.float32), g_ref[...], b_ref[...], eps)
    o_ref[...] = jnp.dot(xn.astype(jnp.bfloat16), wh_ref[...],
                         preferred_element_type=jnp.float32).astype(o_ref.dtype)


def gpt_forward(in_idx, params, *, num_heads, eps=1e-5):
    """Forward pass of GPTModel; returns logits (B, T, vocab)."""
    tok_emb = params["tok_emb"]                     # (V, D) f32
    pos_emb = params["pos_emb"]                     # (Tctx, D) f32
    B, T = in_idx.shape
    V, D = tok_emb.shape
    H = num_heads
    hd = D // H
    layers = params["layers"]
    L = len(layers)

    # Token-id gather + position add in plain JAX (dropout is identity).
    # TODO(synk): the embedding gather stays in XLA; a Pallas gather would need
    # a scalar-prefetch Element index_map and is not worth it at this size.
    x = jnp.take(tok_emb, in_idx, axis=0) + pos_emb[:T][None]     # (B, T, D)
    x_flat = x.reshape(B * T, D)

    # Batch chunking: per-layer weights are streamed once per CHUNK, so prefer
    # few, big chunks; keep 2 chunks when the batch allows it so the "parallel"
    # axis can still split across v7x's two TensorCores.
    num_chunks = 2 if (B >= 4 and B % 2 == 0) else 1
    Bc = B // num_chunks
    Rc = Bc * T

    # ---- pack per-layer weights: flat fused QKV, bf16 matmul operands --------
    scale = 1.0 / (hd ** 0.5)

    def pack(lp):
        wqkv = jnp.concatenate([lp["wq"] * scale, lp["wk"], lp["wv"]],
                               axis=1)                              # (D, 3D)
        return dict(
            g1=lp["ln1_g"].reshape(1, D), b1=lp["ln1_b"].reshape(1, D),
            wqkv=wqkv.astype(jnp.bfloat16),
            wo=lp["wo"].astype(jnp.bfloat16), bo=lp["bo"].reshape(1, D),
            g2=lp["ln2_g"].reshape(1, D), b2=lp["ln2_b"].reshape(1, D),
            w1=lp["w1"].astype(jnp.bfloat16), c1=lp["b1"].reshape(1, 4 * D),
            w2=lp["w2"].astype(jnp.bfloat16), c2=lp["b2"].reshape(1, D))

    packed = [pack(lp) for lp in layers]
    stack = lambda key: jnp.stack([p[key] for p in packed], axis=0)
    g1, b1, wqkv, wo, bo, g2, b2, w1, c1, w2, c2 = [
        stack(k) for k in ("g1", "b1", "wqkv", "wo", "bo",
                           "g2", "b2", "w1", "c1", "w2", "c2")]

    # Additive causal bias, computed once (not per grid step).
    col = jax.lax.broadcasted_iota(jnp.int32, (T, T), 1)
    row = jax.lax.broadcasted_iota(jnp.int32, (T, T), 0)
    causal_bias = jnp.where(col > row, jnp.float32(-jnp.inf), jnp.float32(0.0))

    vmem_limit = _vmem_limit_bytes()

    block_kernel = functools.partial(
        _gpt_block_kernel, num_heads=H, head_dim=hd, seq_len=T,
        rows_per_chunk=Bc, eps=eps)

    wmap3 = lambda b, l: (l, 0, 0)          # per-layer weights (layer axis)
    rowmap = lambda b, l: (b, 0)            # activations (chunk axis)
    cmap = lambda b, l: (0, 0)              # constants (causal bias)

    x_out = pl.pallas_call(
        block_kernel,
        out_shape=jax.ShapeDtypeStruct((B * T, D), jnp.float32),
        grid=(num_chunks, L),
        in_specs=[
            pl.BlockSpec((Rc, D), rowmap),                      # embeddings
            pl.BlockSpec((T, T), cmap),                         # causal bias
            pl.BlockSpec((1, 1, D), wmap3),                     # ln1 gamma
            pl.BlockSpec((1, 1, D), wmap3),                     # ln1 beta
            pl.BlockSpec((1, D, 3 * D), wmap3),                 # fused QKV weight
            pl.BlockSpec((1, D, D), wmap3),                     # out_proj weight
            pl.BlockSpec((1, 1, D), wmap3),                     # out_proj bias
            pl.BlockSpec((1, 1, D), wmap3),                     # ln2 gamma
            pl.BlockSpec((1, 1, D), wmap3),                     # ln2 beta
            pl.BlockSpec((1, D, 4 * D), wmap3),                 # ffn w1
            pl.BlockSpec((1, 1, 4 * D), wmap3),                 # ffn b1
            pl.BlockSpec((1, 4 * D, D), wmap3),                 # ffn w2
            pl.BlockSpec((1, 1, D), wmap3),                     # ffn b2
        ],
        out_specs=pl.BlockSpec((Rc, D), rowmap),
        scratch_shapes=[pltpu.VMEM((Rc, D), jnp.float32),       # resident act
                        pltpu.VMEM((Rc, D), jnp.float32)],      # attn context
        compiler_params=pltpu.CompilerParams(
            dimension_semantics=("parallel", "arbitrary"),
            vmem_limit_bytes=vmem_limit),
    )(x_flat, causal_bias, g1, b1, wqkv, wo, bo, g2, b2, w1, c1, w2, c2)

    # ---- final LayerNorm + vocab head, tiled over (rows, vocab) --------------
    R = B * T
    tm = _pick_tile(R, (512, 256, 128, 64, 32, 16, 8))
    tn = _pick_tile(V, (512, 256, 128))
    head_kernel = functools.partial(_final_head_kernel, eps=eps)
    logits = pl.pallas_call(
        head_kernel,
        out_shape=jax.ShapeDtypeStruct((R, V), jnp.float32),
        grid=(R // tm, V // tn),
        in_specs=[
            pl.BlockSpec((tm, D), lambda i, j: (i, 0)),
            pl.BlockSpec((1, D), lambda i, j: (0, 0)),
            pl.BlockSpec((1, D), lambda i, j: (0, 0)),
            pl.BlockSpec((D, tn), lambda i, j: (0, j)),         # streamed w_head
        ],
        out_specs=pl.BlockSpec((tm, tn), lambda i, j: (i, j)),
        compiler_params=pltpu.CompilerParams(
            dimension_semantics=("parallel", "parallel"),
            vmem_limit_bytes=vmem_limit),
    )(x_out,
      params["lnf_g"].reshape(1, D),
      params["lnf_b"].reshape(1, D),
      params["w_head"].astype(jnp.bfloat16))

    return logits.reshape(B, T, V)


def _reference_gpt(in_idx, params, *, num_heads, eps=1e-5):
    """Pure-JAX f32 reference mirroring the PyTorch GPTModel (dropout=identity)."""
    tok_emb = params["tok_emb"]
    pos_emb = params["pos_emb"]
    B, T = in_idx.shape
    D = tok_emb.shape[1]
    H = num_heads
    hd = D // H

    def ln(x, g, b):
        m = x.mean(-1, keepdims=True)
        v = ((x - m) ** 2).mean(-1, keepdims=True)
        return (x - m) / jnp.sqrt(v + eps) * g + b

    x = tok_emb[in_idx] + pos_emb[:T][None]
    mask = jnp.triu(jnp.ones((T, T), dtype=bool), k=1)
    for lp in params["layers"]:
        h = ln(x, lp["ln1_g"], lp["ln1_b"])
        q = (h @ lp["wq"]).reshape(B, T, H, hd).transpose(0, 2, 1, 3)
        k = (h @ lp["wk"]).reshape(B, T, H, hd).transpose(0, 2, 1, 3)
        v = (h @ lp["wv"]).reshape(B, T, H, hd).transpose(0, 2, 1, 3)
        s = jnp.einsum("bhqd,bhkd->bhqk", q, k)
        s = jnp.where(mask[None, None], -jnp.inf, s)
        w = jax.nn.softmax(s / (hd ** 0.5), axis=-1)
        ctx = jnp.einsum("bhqk,bhkd->bhqd", w, v).transpose(0, 2, 1, 3)
        ctx = ctx.reshape(B, T, D)
        x = x + ctx @ lp["wo"] + lp["bo"]
        h2 = ln(x, lp["ln2_g"], lp["ln2_b"])
        f = h2 @ lp["w1"] + lp["b1"]
        f = 0.5 * f * (1.0 + jnp.tanh(jnp.sqrt(2.0 / jnp.pi)
                                      * (f + 0.044715 * f ** 3)))
        x = x + (f @ lp["w2"] + lp["b2"])
    x = ln(x, params["lnf_g"], params["lnf_b"])
    return x @ params["w_head"]


if __name__ == "__main__":
    cfg = dict(vocab_size=128, context_length=8, emb_dim=32,
               num_head=4, n_layers=3, dropout=0.0, qkv_bias=False)
    B = 2
    T = cfg["context_length"]
    D = cfg["emb_dim"]
    V = cfg["vocab_size"]
    H = cfg["num_head"]
    L = cfg["n_layers"]

    key = jax.random.PRNGKey(0)
    keys = iter(jax.random.split(key, 8 + 16 * L))

    def rnd(shape, scale):
        return jax.random.normal(next(keys), shape, dtype=jnp.float32) * scale

    params = dict(
        tok_emb=rnd((V, D), 1.0),
        pos_emb=rnd((T, D), 1.0),
        lnf_g=1.0 + rnd((D,), 0.1),
        lnf_b=rnd((D,), 0.1),
        w_head=rnd((D, V), 0.1),
        layers=[],
    )
    for _ in range(L):
        params["layers"].append(dict(
            ln1_g=1.0 + rnd((D,), 0.1), ln1_b=rnd((D,), 0.1),
            wq=rnd((D, D), 0.1), wk=rnd((D, D), 0.1), wv=rnd((D, D), 0.1),
            wo=rnd((D, D), 0.1), bo=rnd((D,), 0.1),
            ln2_g=1.0 + rnd((D,), 0.1), ln2_b=rnd((D,), 0.1),
            w1=rnd((D, 4 * D), 0.1), b1=rnd((4 * D,), 0.1),
            w2=rnd((4 * D, D), 0.1), b2=rnd((D,), 0.1),
        ))

    in_idx = jax.random.randint(next(keys), (B, T), 0, V)

    logits = gpt_forward(in_idx, params, num_heads=H)
    logits = jax.block_until_ready(logits)

    ref = _reference_gpt(in_idx, params, num_heads=H)
    assert logits.shape == (B, T, V)
    max_err = float(jnp.max(jnp.abs(logits - ref)))
    # bf16 MXU operands + approx reciprocal -> slightly looser tolerance vs f32.
    assert jnp.allclose(logits, ref, atol=3e-2, rtol=3e-2), (
        f"mismatch vs reference (max abs err {max_err:.4f})")

    print("KERNEL_OK")
</pallas_src>

<mosaic_0001>
module attributes {stable_mosaic.version = 11 : i64} {
  func.func @_gpt_block_kernel(%arg0: i32, %arg1: i32, %arg2: memref<16x32xf32, #tpu.memory_space<vmem>>, %arg3: memref<8x8xf32, #tpu.memory_space<vmem>>, %arg4: memref<1x1x32xf32, #tpu.memory_space<vmem>>, %arg5: memref<1x1x32xf32, #tpu.memory_space<vmem>>, %arg6: memref<1x32x96xbf16, #tpu.memory_space<vmem>>, %arg7: memref<1x32x32xbf16, #tpu.memory_space<vmem>>, %arg8: memref<1x1x32xf32, #tpu.memory_space<vmem>>, %arg9: memref<1x1x32xf32, #tpu.memory_space<vmem>>, %arg10: memref<1x1x32xf32, #tpu.memory_space<vmem>>, %arg11: memref<1x32x128xbf16, #tpu.memory_space<vmem>>, %arg12: memref<1x1x128xf32, #tpu.memory_space<vmem>>, %arg13: memref<1x128x32xbf16, #tpu.memory_space<vmem>>, %arg14: memref<1x1x32xf32, #tpu.memory_space<vmem>>, %arg15: memref<16x32xf32, #tpu.memory_space<vmem>>, %arg16: memref<16x32xf32, #tpu.memory_space<vmem>>, %arg17: memref<16x32xf32, #tpu.memory_space<vmem>>) attributes {dimension_semantics = [#tpu.dimension_semantics<parallel>, #tpu.dimension_semantics<arbitrary>], iteration_bounds = array<i64: 1, 3>, scalar_prefetch = 0 : i64, scratch_operands = 2 : i64, tpu.core_type = #tpu.core_type<tc>, window_params = [{transform_indices = @transform_0, window_bounds = array<i64: 16, 32>}, {pipeline_mode = #tpu.pipeline_mode<synchronous>, transform_indices = @transform_1, window_bounds = array<i64: 8, 8>}, {transform_indices = @transform_2, window_bounds = array<i64: 1, 1, 32>}, {transform_indices = @transform_3, window_bounds = array<i64: 1, 1, 32>}, {transform_indices = @transform_4, window_bounds = array<i64: 1, 32, 96>}, {transform_indices = @transform_5, window_bounds = array<i64: 1, 32, 32>}, {transform_indices = @transform_6, window_bounds = array<i64: 1, 1, 32>}, {transform_indices = @transform_7, window_bounds = array<i64: 1, 1, 32>}, {transform_indices = @transform_8, window_bounds = array<i64: 1, 1, 32>}, {transform_indices = @transform_9, window_bounds = array<i64: 1, 32, 128>}, {transform_indices = @transform_10, window_bounds = array<i64: 1, 1, 128>}, {transform_indices = @transform_11, window_bounds = array<i64: 1, 128, 32>}, {transform_indices = @transform_12, window_bounds = array<i64: 1, 1, 32>}, {transform_indices = @transform_13, window_bounds = array<i64: 16, 32>}]} {
    %c0_i32 = arith.constant 0 : i32
    %0 = arith.cmpi eq, %arg1, %c0_i32 : i32
    %1 = arith.extui %0 : i1 to i32
    %c0_i32_0 = arith.constant 0 : i32
    %2 = arith.cmpi ne, %1, %c0_i32_0 : i32
    scf.if %2 {
      %c0_104 = arith.constant 0 : index
      %c0_105 = arith.constant 0 : index
      %273 = vector.load %arg2[%c0_104, %c0_105] : memref<16x32xf32, #tpu.memory_space<vmem>>, vector<16x32xf32>
      %c0_106 = arith.constant 0 : index
      %c0_107 = arith.constant 0 : index
      %274 = vector.load %arg16[%c0_106, %c0_107] : memref<16x32xf32, #tpu.memory_space<vmem>>, vector<16x32xf32>
      tpu.vector_store %arg16[%c0_106, %c0_107], %273 {strides = array<i32>} : memref<16x32xf32, #tpu.memory_space<vmem>>, vector<16x32xf32>,
    } else {
    }
    %c0 = arith.constant 0 : index
    %c0_1 = arith.constant 0 : index
    %3 = vector.load %arg16[%c0, %c0_1] : memref<16x32xf32, #tpu.memory_space<vmem>>, vector<16x32xf32>
    %c0_2 = arith.constant 0 : index
    %c0_3 = arith.constant 0 : index
    %c0_4 = arith.constant 0 : index
    %4 = vector.load %arg4[%c0_2, %c0_3, %c0_4] : memref<1x1x32xf32, #tpu.memory_space<vmem>>, vector<1x1x32xf32>
    %5 = vector.shape_cast %4 : vector<1x1x32xf32> to vector<1x32xf32>
    %c0_5 = arith.constant 0 : index
    %c0_6 = arith.constant 0 : index
    %c0_7 = arith.constant 0 : index
    %6 = vector.load %arg5[%c0_5, %c0_6, %c0_7] : memref<1x1x32xf32, #tpu.memory_space<vmem>>, vector<1x1x32xf32>
    %7 = vector.shape_cast %6 : vector<1x1x32xf32> to vector<1x32xf32>
    %cst = arith.constant dense<0.000000e+00> : vector<16xf32>
    %8 = vector.multi_reduction <add>, %3, %cst [1] : vector<16x32xf32> to vector<16xf32>
    %9 = vector.shape_cast %8 : vector<16xf32> to vector<16x1xf32>
    %cst_8 = arith.constant 3.200000e+01 : f32
    %10 = vector.broadcast %cst_8 : f32 to vector<16x1xf32>
    %11 = arith.divf %9, %10 : vector<16x1xf32>
    %12 = vector.broadcast %11 : vector<16x1xf32> to vector<16x32xf32>
    %13 = arith.subf %3, %12 : vector<16x32xf32>
    %14 = arith.mulf %13, %13 : vector<16x32xf32>
    %cst_9 = arith.constant dense<0.000000e+00> : vector<16xf32>
    %15 = vector.multi_reduction <add>, %14, %cst_9 [1] : vector<16x32xf32> to vector<16xf32>
    %16 = vector.shape_cast %15 : vector<16xf32> to vector<16x1xf32>
    %cst_10 = arith.constant 3.200000e+01 : f32
    %17 = vector.broadcast %cst_10 : f32 to vector<16x1xf32>
    %18 = arith.divf %16, %17 : vector<16x1xf32>
    %19 = vector.broadcast %11 : vector<16x1xf32> to vector<16x32xf32>
    %20 = arith.subf %3, %19 : vector<16x32xf32>
    %cst_11 = arith.constant 9.99999974E-6 : f32
    %21 = vector.broadcast %cst_11 : f32 to vector<16x1xf32>
    %22 = arith.addf %18, %21 : vector<16x1xf32>
    %23 = math.rsqrt %22 : vector<16x1xf32>
    %24 = vector.broadcast %23 : vector<16x1xf32> to vector<16x32xf32>
    %25 = arith.mulf %20, %24 : vector<16x32xf32>
    %26 = vector.broadcast %5 : vector<1x32xf32> to vector<16x32xf32>
    %27 = arith.mulf %25, %26 : vector<16x32xf32>
    %28 = vector.broadcast %7 : vector<1x32xf32> to vector<16x32xf32>
    %29 = arith.addf %27, %28 : vector<16x32xf32>
    %30 = arith.truncf %29 : vector<16x32xf32> to vector<16x32xbf16>
    %c0_12 = arith.constant 0 : index
    %c0_13 = arith.constant 0 : index
    %c0_14 = arith.constant 0 : index
    %31 = vector.load %arg6[%c0_12, %c0_13, %c0_14] : memref<1x32x96xbf16, #tpu.memory_space<vmem>>, vector<1x32x96xbf16>
    %32 = vector.shape_cast %31 : vector<1x32x96xbf16> to vector<32x96xbf16>
    %cst_15 = arith.constant dense<0.000000e+00> : vector<16x96xf32>
    %33 = tpu.matmul %30, %32, %cst_15 {dimension_numbers = #tpu.dot_dimension_numbers<[1], [0], [0], [1], [0, 0, 1, 1], [], []>} : vector<16x32xbf16>, vector<32x96xbf16>, vector<16x96xf32> -> vector<16x96xf32>
    %c0_16 = arith.constant 0 : index
    %c0_17 = arith.constant 0 : index
    %34 = vector.load %arg3[%c0_16, %c0_17] : memref<8x8xf32, #tpu.memory_space<vmem>>, vector<8x8xf32>
    %35 = vector.extract_strided_slice %33 {offsets = [0, 0], sizes = [8, 8], strides = [1, 1]} : vector<16x96xf32> to vector<8x8xf32>
    %36 = arith.truncf %35 : vector<8x8xf32> to vector<8x8xbf16>
    %37 = vector.extract_strided_slice %33 {offsets = [0, 32], sizes = [8, 8], strides = [1, 1]} : vector<16x96xf32> to vector<8x8xf32>
    %38 = arith.truncf %37 : vector<8x8xf32> to vector<8x8xbf16>
    %39 = vector.extract_strided_slice %33 {offsets = [0, 64], sizes = [8, 8], strides = [1, 1]} : vector<16x96xf32> to vector<8x8xf32>
    %40 = arith.truncf %39 : vector<8x8xf32> to vector<8x8xbf16>
    %cst_18 = arith.constant dense<0.000000e+00> : vector<8x8xf32>
    %41 = tpu.matmul %36, %38, %cst_18 {dimension_numbers = #tpu.dot_dimension_numbers<[1], [1], [0], [0], [0, 0, 1, 0], [], []>} : vector<8x8xbf16>, vector<8x8xbf16>, vector<8x8xf32> -> vector<8x8xf32>
    %42 = arith.addf %41, %34 : vector<8x8xf32>
    %cst_19 = arith.constant dense<0xFF800000> : vector<8xf32>
    %43 = vector.multi_reduction <maximumf>, %42, %cst_19 [1] : vector<8x8xf32> to vector<8xf32>
    %44 = vector.shape_cast %43 : vector<8xf32> to vector<8x1xf32>
    %45 = vector.broadcast %44 : vector<8x1xf32> to vector<8x8xf32>
    %46 = arith.subf %42, %45 : vector<8x8xf32>
    %47 = math.exp %46 : vector<8x8xf32>
    %cst_20 = arith.constant dense<0.000000e+00> : vector<8xf32>
    %48 = vector.multi_reduction <add>, %47, %cst_20 [1] : vector<8x8xf32> to vector<8xf32>
    %49 = vector.shape_cast %48 : vector<8xf32> to vector<8x1xf32>
    %50 = tpu.reciprocal %49 {approx = true} : vector<8x1xf32> -> vector<8x1xf32>
    %51 = vector.broadcast %50 : vector<8x1xf32> to vector<8x8xf32>
    %52 = arith.mulf %47, %51 : vector<8x8xf32>
    %53 = arith.truncf %52 : vector<8x8xf32> to vector<8x8xbf16>
    %cst_21 = arith.constant dense<0.000000e+00> : vector<8x8xf32>
    %54 = tpu.matmul %53, %40, %cst_21 {dimension_numbers = #tpu.dot_dimension_numbers<[1], [0], [0], [1], [0, 0, 1, 1], [], []>} : vector<8x8xbf16>, vector<8x8xbf16>, vector<8x8xf32> -> vector<8x8xf32>
    %c0_22 = arith.constant 0 : index
    %c0_23 = arith.constant 0 : index
    %55 = vector.load %arg17[%c0_22, %c0_23] : memref<16x32xf32, #tpu.memory_space<vmem>>, vector<8x8xf32>
    tpu.vector_store %arg17[%c0_22, %c0_23], %54 {strides = array<i32>} : memref<16x32xf32, #tpu.memory_space<vmem>>, vector<8x8xf32>,
    %56 = vector.extract_strided_slice %33 {offsets = [0, 8], sizes = [8, 8], strides = [1, 1]} : vector<16x96xf32> to vector<8x8xf32>
    %57 = arith.truncf %56 : vector<8x8xf32> to vector<8x8xbf16>
    %58 = vector.extract_strided_slice %33 {offsets = [0, 40], sizes = [8, 8], strides = [1, 1]} : vector<16x96xf32> to vector<8x8xf32>
    %59 = arith.truncf %58 : vector<8x8xf32> to vector<8x8xbf16>
    %60 = vector.extract_strided_slice %33 {offsets = [0, 72], sizes = [8, 8], strides = [1, 1]} : vector<16x96xf32> to vector<8x8xf32>
    %61 = arith.truncf %60 : vector<8x8xf32> to vector<8x8xbf16>
    %cst_24 = arith.constant dense<0.000000e+00> : vector<8x8xf32>
    %62 = tpu.matmul %57, %59, %cst_24 {dimension_numbers = #tpu.dot_dimension_numbers<[1], [1], [0], [0], [0, 0, 1, 0], [], []>} : vector<8x8xbf16>, vector<8x8xbf16>, vector<8x8xf32> -> vector<8x8xf32>
    %63 = arith.addf %62, %34 : vector<8x8xf32>
    %cst_25 = arith.constant dense<0xFF800000> : vector<8xf32>
    %64 = vector.multi_reduction <maximumf>, %63, %cst_25 [1] : vector<8x8xf32> to vector<8xf32>
    %65 = vector.shape_cast %64 : vector<8xf32> to vector<8x1xf32>
    %66 = vector.broadcast %65 : vector<8x1xf32> to vector<8x8xf32>
    %67 = arith.subf %63, %66 : vector<8x8xf32>
    %68 = math.exp %67 : vector<8x8xf32>
    %cst_26 = arith.constant dense<0.000000e+00> : vector<8xf32>
    %69 = vector.multi_reduction <add>, %68, %cst_26 [1] : vector<8x8xf32> to vector<8xf32>
    %70 = vector.shape_cast %69 : vector<8xf32> to vector<8x1xf32>
    %71 = tpu.reciprocal %70 {approx = true} : vector<8x1xf32> -> vector<8x1xf32>
    %72 = vector.broadcast %71 : vector<8x1xf32> to vector<8x8xf32>
    %73 = arith.mulf %68, %72 : vector<8x8xf32>
    %74 = arith.truncf %73 : vector<8x8xf32> to vector<8x8xbf16>
    %cst_27 = arith.constant dense<0.000000e+00> : vector<8x8xf32>
    %75 = tpu.matmul %74, %61, %cst_27 {dimension_numbers = #tpu.dot_dimension_numbers<[1], [0], [0], [1], [0, 0, 1, 1], [], []>} : vector<8x8xbf16>, vector<8x8xbf16>, vector<8x8xf32> -> vector<8x8xf32>
    %c0_28 = arith.constant 0 : index
    %c8 = arith.constant 8 : index
    %76 = vector.load %arg17[%c0_28, %c8] : memref<16x32xf32, #tpu.memory_space<vmem>>, vector<8x8xf32>
    tpu.vector_store %arg17[%c0_28, %c8], %75 {strides = array<i32>} : memref<16x32xf32, #tpu.memory_space<vmem>>, vector<8x8xf32>,
    %77 = vector.extract_strided_slice %33 {offsets = [0, 16], sizes = [8, 8], strides = [1, 1]} : vector<16x96xf32> to vector<8x8xf32>
    %78 = arith.truncf %77 : vector<8x8xf32> to vector<8x8xbf16>
    %79 = vector.extract_strided_slice %33 {offsets = [0, 48], sizes = [8, 8], strides = [1, 1]} : vector<16x96xf32> to vector<8x8xf32>
    %80 = arith.truncf %79 : vector<8x8xf32> to vector<8x8xbf16>
    %81 = vector.extract_strided_slice %33 {offsets = [0, 80], sizes = [8, 8], strides = [1, 1]} : vector<16x96xf32> to vector<8x8xf32>
    %82 = arith.truncf %81 : vector<8x8xf32> to vector<8x8xbf16>
    %cst_29 = arith.constant dense<0.000000e+00> : vector<8x8xf32>
    %83 = tpu.matmul %78, %80, %cst_29 {dimension_numbers = #tpu.dot_dimension_numbers<[1], [1], [0], [0], [0, 0, 1, 0], [], []>} : vector<8x8xbf16>, vector<8x8xbf16>, vector<8x8xf32> -> vector<8x8xf32>
    %84 = arith.addf %83, %34 : vector<8x8xf32>
    %cst_30 = arith.constant dense<0xFF800000> : vector<8xf32>
    %85 = vector.multi_reduction <maximumf>, %84, %cst_30 [1] : vector<8x8xf32> to vector<8xf32>
    %86 = vector.shape_cast %85 : vector<8xf32> to vector<8x1xf32>
    %87 = vector.broadcast %86 : vector<8x1xf32> to vector<8x8xf32>
    %88 = arith.subf %84, %87 : vector<8x8xf32>
    %89 = math.exp %88 : vector<8x8xf32>
    %cst_31 = arith.constant dense<0.000000e+00> : vector<8xf32>
    %90 = vector.multi_reduction <add>, %89, %cst_31 [1] : vector<8x8xf32> to vector<8xf32>
    %91 = vector.shape_cast %90 : vector<8xf32> to vector<8x1xf32>
    %92 = tpu.reciprocal %91 {approx = true} : vector<8x1xf32> -> vector<8x1xf32>
    %93 = vector.broadcast %92 : vector<8x1xf32> to vector<8x8xf32>
    %94 = arith.mulf %89, %93 : vector<8x8xf32>
    %95 = arith.truncf %94 : vector<8x8xf32> to vector<8x8xbf16>
    %cst_32 = arith.constant dense<0.000000e+00> : vector<8x8xf32>
    %96 = tpu.matmul %95, %82, %cst_32 {dimension_numbers = #tpu.dot_dimension_numbers<[1], [0], [0], [1], [0, 0, 1, 1], [], []>} : vector<8x8xbf16>, vector<8x8xbf16>, vector<8x8xf32> -> vector<8x8xf32>
    %c0_33 = arith.constant 0 : index
    %c16 = arith.constant 16 : index
    %97 = vector.load %arg17[%c0_33, %c16] : memref<16x32xf32, #tpu.memory_space<vmem>>, vector<8x8xf32>
    tpu.vector_store %arg17[%c0_33, %c16], %96 {strides = array<i32>} : memref<16x32xf32, #tpu.memory_space<vmem>>, vector<8x8xf32>,
    %98 = vector.extract_strided_slice %33 {offsets = [0, 24], sizes = [8, 8], strides = [1, 1]} : vector<16x96xf32> to vector<8x8xf32>
    %99 = arith.truncf %98 : vector<8x8xf32> to vector<8x8xbf16>
    %100 = vector.extract_strided_slice %33 {offsets = [0, 56], sizes = [8, 8], strides = [1, 1]} : vector<16x96xf32> to vector<8x8xf32>
    %101 = arith.truncf %100 : vector<8x8xf32> to vector<8x8xbf16>
    %102 = vector.extract_strided_slice %33 {offsets = [0, 88], sizes = [8, 8], strides = [1, 1]} : vector<16x96xf32> to vector<8x8xf32>
    %103 = arith.truncf %102 : vector<8x8xf32> to vector<8x8xbf16>
    %cst_34 = arith.constant dense<0.000000e+00> : vector<8x8xf32>
    %104 = tpu.matmul %99, %101, %cst_34 {dimension_numbers = #tpu.dot_dimension_numbers<[1], [1], [0], [0], [0, 0, 1, 0], [], []>} : vector<8x8xbf16>, vector<8x8xbf16>, vector<8x8xf32> -> vector<8x8xf32>
    %105 = arith.addf %104, %34 : vector<8x8xf32>
    %cst_35 = arith.constant dense<0xFF800000> : vector<8xf32>
    %106 = vector.multi_reduction <maximumf>, %105, %cst_35 [1] : vector<8x8xf32> to vector<8xf32>
    %107 = vector.shape_cast %106 : vector<8xf32> to vector<8x1xf32>
    %108 = vector.broadcast %107 : vector<8x1xf32> to vector<8x8xf32>
    %109 = arith.subf %105, %108 : vector<8x8xf32>
    %110 = math.exp %109 : vector<8x8xf32>
    %cst_36 = arith.constant dense<0.000000e+00> : vector<8xf32>
    %111 = vector.multi_reduction <add>, %110, %cst_36 [1] : vector<8x8xf32> to vector<8xf32>
    %112 = vector.shape_cast %111 : vector<8xf32> to vector<8x1xf32>
    %113 = tpu.reciprocal %112 {approx = true} : vector<8x1xf32> -> vector<8x1xf32>
    %114 = vector.broadcast %113 : vector<8x1xf32> to vector<8x8xf32>
    %115 = arith.mulf %110, %114 : vector<8x8xf32>
    %116 = arith.truncf %115 : vector<8x8xf32> to vector<8x8xbf16>
    %cst_37 = arith.constant dense<0.000000e+00> : vector<8x8xf32>
    %117 = tpu.matmul %116, %103, %cst_37 {dimension_numbers = #tpu.dot_dimension_numbers<[1], [0], [0], [1], [0, 0, 1, 1], [], []>} : vector<8x8xbf16>, vector<8x8xbf16>, vector<8x8xf32> -> vector<8x8xf32>
    %c0_38 = arith.constant 0 : index
    %c24 = arith.constant 24 : index
    %118 = vector.load %arg17[%c0_38, %c24] : memref<16x32xf32, #tpu.memory_space<vmem>>, vector<8x8xf32>
    tpu.vector_store %arg17[%c0_38, %c24], %117 {strides = array<i32>} : memref<16x32xf32, #tpu.memory_space<vmem>>, vector<8x8xf32>,
    %119 = vector.extract_strided_slice %33 {offsets = [8, 0], sizes = [8, 8], strides = [1, 1]} : vector<16x96xf32> to vector<8x8xf32>
    %120 = arith.truncf %119 : vector<8x8xf32> to vector<8x8xbf16>
    %121 = vector.extract_strided_slice %33 {offsets = [8, 32], sizes = [8, 8], strides = [1, 1]} : vector<16x96xf32> to vector<8x8xf32>
    %122 = arith.truncf %121 : vector<8x8xf32> to vector<8x8xbf16>
    %123 = vector.extract_strided_slice %33 {offsets = [8, 64], sizes = [8, 8], strides = [1, 1]} : vector<16x96xf32> to vector<8x8xf32>
    %124 = arith.truncf %123 : vector<8x8xf32> to vector<8x8xbf16>
    %cst_39 = arith.constant dense<0.000000e+00> : vector<8x8xf32>
    %125 = tpu.matmul %120, %122, %cst_39 {dimension_numbers = #tpu.dot_dimension_numbers<[1], [1], [0], [0], [0, 0, 1, 0], [], []>} : vector<8x8xbf16>, vector<8x8xbf16>, vector<8x8xf32> -> vector<8x8xf32>
    %126 = arith.addf %125, %34 : vector<8x8xf32>
    %cst_40 = arith.constant dense<0xFF800000> : vector<8xf32>
    %127 = vector.multi_reduction <maximumf>, %126, %cst_40 [1] : vector<8x8xf32> to vector<8xf32>
    %128 = vector.shape_cast %127 : vector<8xf32> to vector<8x1xf32>
    %129 = vector.broadcast %128 : vector<8x1xf32> to vector<8x8xf32>
    %130 = arith.subf %126, %129 : vector<8x8xf32>
    %131 = math.exp %130 : vector<8x8xf32>
    %cst_41 = arith.constant dense<0.000000e+00> : vector<8xf32>
    %132 = vector.multi_reduction <add>, %131, %cst_41 [1] : vector<8x8xf32> to vector<8xf32>
    %133 = vector.shape_cast %132 : vector<8xf32> to vector<8x1xf32>
    %134 = tpu.reciprocal %133 {approx = true} : vector<8x1xf32> -> vector<8x1xf32>
    %135 = vector.broadcast %134 : vector<8x1xf32> to vector<8x8xf32>
    %136 = arith.mulf %131, %135 : vector<8x8xf32>
    %137 = arith.truncf %136 : vector<8x8xf32> to vector<8x8xbf16>
    %cst_42 = arith.constant dense<0.000000e+00> : vector<8x8xf32>
    %138 = tpu.matmul %137, %124, %cst_42 {dimension_numbers = #tpu.dot_dimension_numbers<[1], [0], [0], [1], [0, 0, 1, 1], [], []>} : vector<8x8xbf16>, vector<8x8xbf16>, vector<8x8xf32> -> vector<8x8xf32>
    %c8_43 = arith.constant 8 : index
    %c0_44 = arith.constant 0 : index
    %139 = vector.load %arg17[%c8_43, %c0_44] : memref<16x32xf32, #tpu.memory_space<vmem>>, vector<8x8xf32>
    tpu.vector_store %arg17[%c8_43, %c0_44], %138 {strides = array<i32>} : memref<16x32xf32, #tpu.memory_space<vmem>>, vector<8x8xf32>,
    %140 = vector.extract_strided_slice %33 {offsets = [8, 8], sizes = [8, 8], strides = [1, 1]} : vector<16x96xf32> to vector<8x8xf32>
    %141 = arith.truncf %140 : vector<8x8xf32> to vector<8x8xbf16>
    %142 = vector.extract_strided_slice %33 {offsets = [8, 40], sizes = [8, 8], strides = [1, 1]} : vector<16x96xf32> to vector<8x8xf32>
    %143 = arith.truncf %142 : vector<8x8xf32> to vector<8x8xbf16>
    %144 = vector.extract_strided_slice %33 {offsets = [8, 72], sizes = [8, 8], strides = [1, 1]} : vector<16x96xf32> to vector<8x8xf32>
    %145 = arith.truncf %144 : vector<8x8xf32> to vector<8x8xbf16>
    %cst_45 = arith.constant dense<0.000000e+00> : vector<8x8xf32>
    %146 = tpu.matmul %141, %143, %cst_45 {dimension_numbers = #tpu.dot_dimension_numbers<[1], [1], [0], [0], [0, 0, 1, 0], [], []>} : vector<8x8xbf16>, vector<8x8xbf16>, vector<8x8xf32> -> vector<8x8xf32>
    %147 = arith.addf %146, %34 : vector<8x8xf32>
    %cst_46 = arith.constant dense<0xFF800000> : vector<8xf32>
    %148 = vector.multi_reduction <maximumf>, %147, %cst_46 [1] : vector<8x8xf32> to vector<8xf32>
    %149 = vector.shape_cast %148 : vector<8xf32> to vector<8x1xf32>
    %150 = vector.broadcast %149 : vector<8x1xf32> to vector<8x8xf32>
    %151 = arith.subf %147, %150 : vector<8x8xf32>
    %152 = math.exp %151 : vector<8x8xf32>
    %cst_47 = arith.constant dense<0.000000e+00> : vector<8xf32>
    %153 = vector.multi_reduction <add>, %152, %cst_47 [1] : vector<8x8xf32> to vector<8xf32>
    %154 = vector.shape_cast %153 : vector<8xf32> to vector<8x1xf32>
    %155 = tpu.reciprocal %154 {approx = true} : vector<8x1xf32> -> vector<8x1xf32>
    %156 = vector.broadcast %155 : vector<8x1xf32> to vector<8x8xf32>
    %157 = arith.mulf %152, %156 : vector<8x8xf32>
    %158 = arith.truncf %157 : vector<8x8xf32> to vector<8x8xbf16>
    %cst_48 = arith.constant dense<0.000000e+00> : vector<8x8xf32>
    %159 = tpu.matmul %158, %145, %cst_48 {dimension_numbers = #tpu.dot_dimension_numbers<[1], [0], [0], [1], [0, 0, 1, 1], [], []>} : vector<8x8xbf16>, vector<8x8xbf16>, vector<8x8xf32> -> vector<8x8xf32>
    %c8_49 = arith.constant 8 : index
    %c8_50 = arith.constant 8 : index
    %160 = vector.load %arg17[%c8_49, %c8_50] : memref<16x32xf32, #tpu.memory_space<vmem>>, vector<8x8xf32>
    tpu.vector_store %arg17[%c8_49, %c8_50], %159 {strides = array<i32>} : memref<16x32xf32, #tpu.memory_space<vmem>>, vector<8x8xf32>,
    %161 = vector.extract_strided_slice %33 {offsets = [8, 16], sizes = [8, 8], strides = [1, 1]} : vector<16x96xf32> to vector<8x8xf32>
    %162 = arith.truncf %161 : vector<8x8xf32> to vector<8x8xbf16>
    %163 = vector.extract_strided_slice %33 {offsets = [8, 48], sizes = [8, 8], strides = [1, 1]} : vector<16x96xf32> to vector<8x8xf32>
    %164 = arith.truncf %163 : vector<8x8xf32> to vector<8x8xbf16>
    %165 = vector.extract_strided_slice %33 {offsets = [8, 80], sizes = [8, 8], strides = [1, 1]} : vector<16x96xf32> to vector<8x8xf32>
    %166 = arith.truncf %165 : vector<8x8xf32> to vector<8x8xbf16>
    %cst_51 = arith.constant dense<0.000000e+00> : vector<8x8xf32>
    %167 = tpu.matmul %162, %164, %cst_51 {dimension_numbers = #tpu.dot_dimension_numbers<[1], [1], [0], [0], [0, 0, 1, 0], [], []>} : vector<8x8xbf16>, vector<8x8xbf16>, vector<8x8xf32> -> vector<8x8xf32>
    %168 = arith.addf %167, %34 : vector<8x8xf32>
    %cst_52 = arith.constant dense<0xFF800000> : vector<8xf32>
    %169 = vector.multi_reduction <maximumf>, %168, %cst_52 [1] : vector<8x8xf32> to vector<8xf32>
    %170 = vector.shape_cast %169 : vector<8xf32> to vector<8x1xf32>
    %171 = vector.broadcast %170 : vector<8x1xf32> to vector<8x8xf32>
    %172 = arith.subf %168, %171 : vector<8x8xf32>
    %173 = math.exp %172 : vector<8x8xf32>
    %cst_53 = arith.constant dense<0.000000e+00> : vector<8xf32>
    %174 = vector.multi_reduction <add>, %173, %cst_53 [1] : vector<8x8xf32> to vector<8xf32>
    %175 = vector.shape_cast %174 : vector<8xf32> to vector<8x1xf32>
    %176 = tpu.reciprocal %175 {approx = true} : vector<8x1xf32> -> vector<8x1xf32>
    %177 = vector.broadcast %176 : vector<8x1xf32> to vector<8x8xf32>
    %178 = arith.mulf %173, %177 : vector<8x8xf32>
    %179 = arith.truncf %178 : vector<8x8xf32> to vector<8x8xbf16>
    %cst_54 = arith.constant dense<0.000000e+00> : vector<8x8xf32>
    %180 = tpu.matmul %179, %166, %cst_54 {dimension_numbers = #tpu.dot_dimension_numbers<[1], [0], [0], [1], [0, 0, 1, 1], [], []>} : vector<8x8xbf16>, vector<8x8xbf16>, vector<8x8xf32> -> vector<8x8xf32>
    %c8_55 = arith.constant 8 : index
    %c16_56 = arith.constant 16 : index
    %181 = vector.load %arg17[%c8_55, %c16_56] : memref<16x32xf32, #tpu.memory_space<vmem>>, vector<8x8xf32>
    tpu.vector_store %arg17[%c8_55, %c16_56], %180 {strides = array<i32>} : memref<16x32xf32, #tpu.memory_space<vmem>>, vector<8x8xf32>,
    %182 = vector.extract_strided_slice %33 {offsets = [8, 24], sizes = [8, 8], strides = [1, 1]} : vector<16x96xf32> to vector<8x8xf32>
    %183 = arith.truncf %182 : vector<8x8xf32> to vector<8x8xbf16>
    %184 = vector.extract_strided_slice %33 {offsets = [8, 56], sizes = [8, 8], strides = [1, 1]} : vector<16x96xf32> to vector<8x8xf32>
    %185 = arith.truncf %184 : vector<8x8xf32> to vector<8x8xbf16>
    %186 = vector.extract_strided_slice %33 {offsets = [8, 88], sizes = [8, 8], strides = [1, 1]} : vector<16x96xf32> to vector<8x8xf32>
    %187 = arith.truncf %186 : vector<8x8xf32> to vector<8x8xbf16>
    %cst_57 = arith.constant dense<0.000000e+00> : vector<8x8xf32>
    %188 = tpu.matmul %183, %185, %cst_57 {dimension_numbers = #tpu.dot_dimension_numbers<[1], [1], [0], [0], [0, 0, 1, 0], [], []>} : vector<8x8xbf16>, vector<8x8xbf16>, vector<8x8xf32> -> vector<8x8xf32>
    %189 = arith.addf %188, %34 : vector<8x8xf32>
    %cst_58 = arith.constant dense<0xFF800000> : vector<8xf32>
    %190 = vector.multi_reduction <maximumf>, %189, %cst_58 [1] : vector<8x8xf32> to vector<8xf32>
    %191 = vector.shape_cast %190 : vector<8xf32> to vector<8x1xf32>
    %192 = vector.broadcast %191 : vector<8x1xf32> to vector<8x8xf32>
    %193 = arith.subf %189, %192 : vector<8x8xf32>
    %194 = math.exp %193 : vector<8x8xf32>
    %cst_59 = arith.constant dense<0.000000e+00> : vector<8xf32>
    %195 = vector.multi_reduction <add>, %194, %cst_59 [1] : vector<8x8xf32> to vector<8xf32>
    %196 = vector.shape_cast %195 : vector<8xf32> to vector<8x1xf32>
    %197 = tpu.reciprocal %196 {approx = true} : vector<8x1xf32> -> vector<8x1xf32>
    %198 = vector.broadcast %197 : vector<8x1xf32> to vector<8x8xf32>
    %199 = arith.mulf %194, %198 : vector<8x8xf32>
    %200 = arith.truncf %199 : vector<8x8xf32> to vector<8x8xbf16>
    %cst_60 = arith.constant dense<0.000000e+00> : vector<8x8xf32>
    %201 = tpu.matmul %200, %187, %cst_60 {dimension_numbers = #tpu.dot_dimension_numbers<[1], [0], [0], [1], [0, 0, 1, 1], [], []>} : vector<8x8xbf16>, vector<8x8xbf16>, vector<8x8xf32> -> vector<8x8xf32>
    %c8_61 = arith.constant 8 : index
    %c24_62 = arith.constant 24 : index
    %202 = vector.load %arg17[%c8_61, %c24_62] : memref<16x32xf32, #tpu.memory_space<vmem>>, vector<8x8xf32>
    tpu.vector_store %arg17[%c8_61, %c24_62], %201 {strides = array<i32>} : memref<16x32xf32, #tpu.memory_space<vmem>>, vector<8x8xf32>,
    %c0_63 = arith.constant 0 : index
    %c0_64 = arith.constant 0 : index
    %203 = vector.load %arg17[%c0_63, %c0_64] : memref<16x32xf32, #tpu.memory_space<vmem>>, vector<16x32xf32>
    %204 = arith.truncf %203 : vector<16x32xf32> to vector<16x32xbf16>
    %c0_65 = arith.constant 0 : index
    %c0_66 = arith.constant 0 : index
    %c0_67 = arith.constant 0 : index
    %205 = vector.load %arg7[%c0_65, %c0_66, %c0_67] : memref<1x32x32xbf16, #tpu.memory_space<vmem>>, vector<1x32x32xbf16>
    %206 = vector.shape_cast %205 : vector<1x32x32xbf16> to vector<32x32xbf16>
    %cst_68 = arith.constant dense<0.000000e+00> : vector<16x32xf32>
    %207 = tpu.matmul %204, %206, %cst_68 {dimension_numbers = #tpu.dot_dimension_numbers<[1], [0], [0], [1], [0, 0, 1, 1], [], []>} : vector<16x32xbf16>, vector<32x32xbf16>, vector<16x32xf32> -> vector<16x32xf32>
    %c0_69 = arith.constant 0 : index
    %c0_70 = arith.constant 0 : index
    %c0_71 = arith.constant 0 : index
    %208 = vector.load %arg8[%c0_69, %c0_70, %c0_71] : memref<1x1x32xf32, #tpu.memory_space<vmem>>, vector<1x1x32xf32>
    %209 = vector.shape_cast %208 : vector<1x1x32xf32> to vector<1x32xf32>
    %210 = vector.broadcast %209 : vector<1x32xf32> to vector<16x32xf32>
    %211 = arith.addf %207, %210 : vector<16x32xf32>
    %212 = arith.addf %3, %211 : vector<16x32xf32>
    %c0_72 = arith.constant 0 : index
    %c0_73 = arith.constant 0 : index
    %c0_74 = arith.constant 0 : index
    %213 = vector.load %arg9[%c0_72, %c0_73, %c0_74] : memref<1x1x32xf32, #tpu.memory_space<vmem>>, vector<1x1x32xf32>
    %214 = vector.shape_cast %213 : vector<1x1x32xf32> to vector<1x32xf32>
    %c0_75 = arith.constant 0 : index
    %c0_76 = arith.constant 0 : index
    %c0_77 = arith.constant 0 : index
    %215 = vector.load %arg10[%c0_75, %c0_76, %c0_77] : memref<1x1x32xf32, #tpu.memory_space<vmem>>, vector<1x1x32xf32>
    %216 = vector.shape_cast %215 : vector<1x1x32xf32> to vector<1x32xf32>
    %cst_78 = arith.constant dense<0.000000e+00> : vector<16xf32>
    %217 = vector.multi_reduction <add>, %212, %cst_78 [1] : vector<16x32xf32> to vector<16xf32>
    %218 = vector.shape_cast %217 : vector<16xf32> to vector<16x1xf32>
    %cst_79 = arith.constant 3.200000e+01 : f32
    %219 = vector.broadcast %cst_79 : f32 to vector<16x1xf32>
    %220 = arith.divf %218, %219 : vector<16x1xf32>
    %221 = vector.broadcast %220 : vector<16x1xf32> to vector<16x32xf32>
    %222 = arith.subf %212, %221 : vector<16x32xf32>
    %223 = arith.mulf %222, %222 : vector<16x32xf32>
    %cst_80 = arith.constant dense<0.000000e+00> : vector<16xf32>
    %224 = vector.multi_reduction <add>, %223, %cst_80 [1] : vector<16x32xf32> to vector<16xf32>
    %225 = vector.shape_cast %224 : vector<16xf32> to vector<16x1xf32>
    %cst_81 = arith.constant 3.200000e+01 : f32
    %226 = vector.broadcast %cst_81 : f32 to vector<16x1xf32>
    %227 = arith.divf %225, %226 : vector<16x1xf32>
    %228 = vector.broadcast %220 : vector<16x1xf32> to vector<16x32xf32>
    %229 = arith.subf %212, %228 : vector<16x32xf32>
    %cst_82 = arith.constant 9.99999974E-6 : f32
    %230 = vector.broadcast %cst_82 : f32 to vector<16x1xf32>
    %231 = arith.addf %227, %230 : vector<16x1xf32>
    %232 = math.rsqrt %231 : vector<16x1xf32>
    %233 = vector.broadcast %232 : vector<16x1xf32> to vector<16x32xf32>
    %234 = arith.mulf %229, %233 : vector<16x32xf32>
    %235 = vector.broadcast %214 : vector<1x32xf32> to vector<16x32xf32>
    %236 = arith.mulf %234, %235 : vector<16x32xf32>
    %237 = vector.broadcast %216 : vector<1x32xf32> to vector<16x32xf32>
    %238 = arith.addf %236, %237 : vector<16x32xf32>
    %239 = arith.truncf %238 : vector<16x32xf32> to vector<16x32xbf16>
    %c0_83 = arith.constant 0 : index
    %c0_84 = arith.constant 0 : index
    %c0_85 = arith.constant 0 : index
    %240 = vector.load %arg11[%c0_83, %c0_84, %c0_85] : memref<1x32x128xbf16, #tpu.memory_space<vmem>>, vector<1x32x128xbf16>
    %241 = vector.shape_cast %240 : vector<1x32x128xbf16> to vector<32x128xbf16>
    %cst_86 = arith.constant dense<0.000000e+00> : vector<16x128xf32>
    %242 = tpu.matmul %239, %241, %cst_86 {dimension_numbers = #tpu.dot_dimension_numbers<[1], [0], [0], [1], [0, 0, 1, 1], [], []>} : vector<16x32xbf16>, vector<32x128xbf16>, vector<16x128xf32> -> vector<16x128xf32>
    %c0_87 = arith.constant 0 : index
    %c0_88 = arith.constant 0 : index
    %c0_89 = arith.constant 0 : index
    %243 = vector.load %arg12[%c0_87, %c0_88, %c0_89] : memref<1x1x128xf32, #tpu.memory_space<vmem>>, vector<1x1x128xf32>
    %244 = vector.shape_cast %243 : vector<1x1x128xf32> to vector<1x128xf32>
    %245 = vector.broadcast %244 : vector<1x128xf32> to vector<16x128xf32>
    %246 = arith.addf %242, %245 : vector<16x128xf32>
    %cst_90 = arith.constant 5.000000e-01 : f32
    %247 = vector.broadcast %cst_90 : f32 to vector<16x128xf32>
    %248 = arith.mulf %247, %246 : vector<16x128xf32>
    %cst_91 = arith.constant 4.471500e-02 : f32
    %249 = vector.broadcast %cst_91 : f32 to vector<16x128xf32>
    %250 = arith.mulf %249, %246 : vector<16x128xf32>
    %251 = arith.mulf %250, %246 : vector<16x128xf32>
    %252 = arith.mulf %251, %246 : vector<16x128xf32>
    %253 = arith.addf %246, %252 : vector<16x128xf32>
    %cst_92 = arith.constant 0.797884583 : f32
    %254 = vector.broadcast %cst_92 : f32 to vector<16x128xf32>
    %255 = arith.mulf %254, %253 : vector<16x128xf32>
    %256 = math.tanh %255 : vector<16x128xf32>
    %cst_93 = arith.constant 1.000000e+00 : f32
    %257 = vector.broadcast %cst_93 : f32 to vector<16x128xf32>
    %258 = arith.addf %257, %256 : vector<16x128xf32>
    %259 = arith.mulf %248, %258 : vector<16x128xf32>
    %260 = arith.truncf %259 : vector<16x128xf32> to vector<16x128xbf16>
    %c0_94 = arith.constant 0 : index
    %c0_95 = arith.constant 0 : index
    %c0_96 = arith.constant 0 : index
    %261 = vector.load %arg13[%c0_94, %c0_95, %c0_96] : memref<1x128x32xbf16, #tpu.memory_space<vmem>>, vector<1x128x32xbf16>
    %262 = vector.shape_cast %261 : vector<1x128x32xbf16> to vector<128x32xbf16>
    %cst_97 = arith.constant dense<0.000000e+00> : vector<16x32xf32>
    %263 = tpu.matmul %260, %262, %cst_97 {dimension_numbers = #tpu.dot_dimension_numbers<[1], [0], [0], [1], [0, 0, 1, 1], [], []>} : vector<16x128xbf16>, vector<128x32xbf16>, vector<16x32xf32> -> vector<16x32xf32>
    %c0_98 = arith.constant 0 : index
    %c0_99 = arith.constant 0 : index
    %c0_100 = arith.constant 0 : index
    %264 = vector.load %arg14[%c0_98, %c0_99, %c0_100] : memref<1x1x32xf32, #tpu.memory_space<vmem>>, vector<1x1x32xf32>
    %265 = vector.shape_cast %264 : vector<1x1x32xf32> to vector<1x32xf32>
    %266 = vector.broadcast %265 : vector<1x32xf32> to vector<16x32xf32>
    %267 = arith.addf %263, %266 : vector<16x32xf32>
    %268 = arith.addf %212, %267 : vector<16x32xf32>
    %c0_101 = arith.constant 0 : index
    %c0_102 = arith.constant 0 : index
    %269 = vector.load %arg16[%c0_101, %c0_102] : memref<16x32xf32, #tpu.memory_space<vmem>>, vector<16x32xf32>
    tpu.vector_store %arg16[%c0_101, %c0_102], %268 {strides = array<i32>} : memref<16x32xf32, #tpu.memory_space<vmem>>, vector<16x32xf32>,
    %c2_i32 = arith.constant 2 : i32
    %270 = arith.cmpi eq, %arg1, %c2_i32 : i32
    %271 = arith.extui %270 : i1 to i32
    %c0_i32_103 = arith.constant 0 : i32
    %272 = arith.cmpi ne, %271, %c0_i32_103 : i32
    scf.if %272 {
      %c0_104 = arith.constant 0 : index
      %c0_105 = arith.constant 0 : index
      %273 = vector.load %arg16[%c0_104, %c0_105] : memref<16x32xf32, #tpu.memory_space<vmem>>, vector<16x32xf32>
      %c0_106 = arith.constant 0 : index
      %c0_107 = arith.constant 0 : index
      %274 = vector.load %arg15[%c0_106, %c0_107] : memref<16x32xf32, #tpu.memory_space<vmem>>, vector<16x32xf32>
      tpu.vector_store %arg15[%c0_106, %c0_107], %273 {strides = array<i32>} : memref<16x32xf32, #tpu.memory_space<vmem>>, vector<16x32xf32>,
    } else {
    }
    return
  }
  func.func @transform_0(%arg0: i32, %arg1: i32) -> (i32, i32) {
    %c0_i32 = arith.constant 0 : i32
    %c0_i32_0 = arith.constant 0 : i32
    return %arg0, %c0_i32 : i32, i32
  }
  func.func @transform_1(%arg0: i32, %arg1: i32) -> (i32, i32) {
    %c0_i32 = arith.constant 0 : i32
    %c0_i32_0 = arith.constant 0 : i32
    %c0_i32_1 = arith.constant 0 : i32
    return %c0_i32, %c0_i32_0 : i32, i32
  }
  func.func @transform_2(%arg0: i32, %arg1: i32) -> (i32, i32, i32) {
    %c0_i32 = arith.constant 0 : i32
    %c0_i32_0 = arith.constant 0 : i32
    %c0_i32_1 = arith.constant 0 : i32
    return %arg1, %c0_i32, %c0_i32_0 : i32, i32, i32
  }
  func.func @transform_3(%arg0: i32, %arg1: i32) -> (i32, i32, i32) {
    %c0_i32 = arith.constant 0 : i32
    %c0_i32_0 = arith.constant 0 : i32
    %c0_i32_1 = arith.constant 0 : i32
    return %arg1, %c0_i32, %c0_i32_0 : i32, i32, i32
  }
  func.func @transform_4(%arg0: i32, %arg1: i32) -> (i32, i32, i32) {
    %c0_i32 = arith.constant 0 : i32
    %c0_i32_0 = arith.constant 0 : i32
    %c0_i32_1 = arith.constant 0 : i32
    return %arg1, %c0_i32, %c0_i32_0 : i32, i32, i32
  }
  func.func @transform_5(%arg0: i32, %arg1: i32) -> (i32, i32, i32) {
    %c0_i32 = arith.constant 0 : i32
    %c0_i32_0 = arith.constant 0 : i32
    %c0_i32_1 = arith.constant 0 : i32
    return %arg1, %c0_i32, %c0_i32_0 : i32, i32, i32
  }
  func.func @transform_6(%arg0: i32, %arg1: i32) -> (i32, i32, i32) {
    %c0_i32 = arith.constant 0 : i32
    %c0_i32_0 = arith.constant 0 : i32
    %c0_i32_1 = arith.constant 0 : i32
    return %arg1, %c0_i32, %c0_i32_0 : i32, i32, i32
  }
  func.func @transform_7(%arg0: i32, %arg1: i32) -> (i32, i32, i32) {
    %c0_i32 = arith.constant 0 : i32
    %c0_i32_0 = arith.constant 0 : i32
    %c0_i32_1 = arith.constant 0 : i32
    return %arg1, %c0_i32, %c0_i32_0 : i32, i32, i32
  }
  func.func @transform_8(%arg0: i32, %arg1: i32) -> (i32, i32, i32) {
    %c0_i32 = arith.constant 0 : i32
    %c0_i32_0 = arith.constant 0 : i32
    %c0_i32_1 = arith.constant 0 : i32
    return %arg1, %c0_i32, %c0_i32_0 : i32, i32, i32
  }
  func.func @transform_9(%arg0: i32, %arg1: i32) -> (i32, i32, i32) {
    %c0_i32 = arith.constant 0 : i32
    %c0_i32_0 = arith.constant 0 : i32
    %c0_i32_1 = arith.constant 0 : i32
    return %arg1, %c0_i32, %c0_i32_0 : i32, i32, i32
  }
  func.func @transform_10(%arg0: i32, %arg1: i32) -> (i32, i32, i32) {
    %c0_i32 = arith.constant 0 : i32
    %c0_i32_0 = arith.constant 0 : i32
    %c0_i32_1 = arith.constant 0 : i32
    return %arg1, %c0_i32, %c0_i32_0 : i32, i32, i32
  }
  func.func @transform_11(%arg0: i32, %arg1: i32) -> (i32, i32, i32) {
    %c0_i32 = arith.constant 0 : i32
    %c0_i32_0 = arith.constant 0 : i32
    %c0_i32_1 = arith.constant 0 : i32
    return %arg1, %c0_i32, %c0_i32_0 : i32, i32, i32
  }
  func.func @transform_12(%arg0: i32, %arg1: i32) -> (i32, i32, i32) {
    %c0_i32 = arith.constant 0 : i32
    %c0_i32_0 = arith.constant 0 : i32
    %c0_i32_1 = arith.constant 0 : i32
    return %arg1, %c0_i32, %c0_i32_0 : i32, i32, i32
  }
  func.func @transform_13(%arg0: i32, %arg1: i32) -> (i32, i32) {
    %c0_i32 = arith.constant 0 : i32
    %c0_i32_0 = arith.constant 0 : i32
    return %arg0, %c0_i32 : i32, i32
  }
}

</mosaic_0001>

<bundles_post_ra>
// kernel: tpu_custom_call.1
= control target key start
LH: loop header
LB: loop body
LE: loop exit
PB: predicated region body
PF: predicated region fallthrough
CT: control target
= control target key end

     0   :  { %s3053_s0 = inlined_call_operand.vmem [shape: f32[16,32], index: 0, kind: input, shape index: {}]   ;;  %s3054_s1 = inlined_call_operand.vmem [shape: f32[8,8], index: 1, kind: input, shape index: {}]   ;;  %s3055_s2 = inlined_call_operand.vmem [shape: f32[3,1,32], index: 2, kind: input, shape index: {}]   ;;  %s3056_s3 = inlined_call_operand.vmem [shape: f32[3,1,32], index: 3, kind: input, shape index: {}]   ;;  %s3057_s4 = inlined_call_operand.vmem [shape: bf16[3,32,96], index: 4, kind: input, shape index: {}]   ;;  %s3058_s5 = inlined_call_operand.vmem [shape: bf16[3,32,32], index: 5, kind: input, shape index: {}]   ;;  %s3059_s6 = inlined_call_operand.vmem [shape: f32[3,1,32], index: 6, kind: input, shape index: {}]   ;;  %s3060_s7 = inlined_call_operand.vmem [shape: f32[3,1,32], index: 7, kind: input, shape index: {}]   ;;  %s3061_s8 = inlined_call_operand.vmem [shape: f32[3,1,32], index: 8, kind: input, shape index: {}]   ;;  %s3062_s9 = inlined_call_operand.vmem [shape: bf16[3,32,128], index: 9, kind: input, shape index: {}]   ;;  %s3063_s10 = inlined_call_operand.vmem [shape: f32[3,1,128], index: 10, kind: input, shape index: {}]   ;;  %s3064_s11 = inlined_call_operand.vmem [shape: bf16[3,128,32], index: 11, kind: input, shape index: {}]   ;;  %s3065_s12 = inlined_call_operand.vmem [shape: f32[3,1,32], index: 12, kind: input, shape index: {}]   ;;  %s3066_s13 = inlined_call_operand.hbm [shape: f32[16,32], index: 13, kind: output, shape index: {}]  }
   0x1   :  { %3069 = sst [smem:[#allocation10_spill]] %s3057_s4 }
   0x2   :  { %3070 = sst [smem:[#allocation11_spill]] %s3058_s5 }
   0x3   :  { %3071 = sst [smem:[#allocation12_spill]] %s3059_s6 }
   0x4   :  { %3072 = sst [smem:[#allocation13_spill]] %s3066_s13 }
   0x5   :  { %18 = vsyncpa [#allocation5], 0  ;;  %s2664_s25 = smov 0   ;;  %s2666_s26 = smov 0  }
   0x6   :  { %s2668_s27 = smov 0  }
   0x7 LB: > { %3073 = sst [smem:[#allocation7_spill]] %s2570_s26  ;;  %s33_s29 = sadd.s32 1, %s2570_s26  ;;  %s2574_s27 = sphi %s2668_s27, %s24_s27   ;;  %s2570_s26 = sphi %s2666_s26, %s3090_s26   ;;  %s2566_s25 = sphi %s2664_s25, %s3089_s25  }
   0x8   : > { %3074 = sst [smem:[#allocation8_spill]] %s2574_s27  ;;  %p34_p0 = scmp.ge.s32.totalorder %s33_s29, 3 }
   0x9   : > { %p2169_p1 = scmp.ge.s32.totalorder %s2574_s27, 1  ;;  %p497_p2 = scmp.lt.s32.totalorder %s2574_s27, 4 }
   0xa   : > { %s3092_s29 = smov (%p34_p0, %s33_s29), 0 }
   0xb   : > { %3075 = sst [smem:[#allocation9_spill]] %s3092_s29  ;;  %p498_p3 = pnand %p2169_p1, %p497_p2 }
   0xc   : > { %p583_p4 = scmp.lt.s32.totalorder (!%p498_p3), %s2566_s25, 2  ;;  %s3077_s4 = sld [smem:[#allocation10_spill]] (!%p498_p3) }
   0xd   : > { %501 = sbr.rel (%p498_p3) target bundleno = 2590 (0xa1e), region = 72  ;;  %s3078_s5 = sld [smem:[#allocation11_spill]] (!%p498_p3) }
   0xe   : > { %p2178_p5 = scmp.ne.s32.totalorder (!%p498_p3), %s2566_s25, 0 }
  0x12   : > { %s2687_s30 = scalar_select %p583_p4, %s2566_s25, 2 }
  0x14   : > { %s2224_s20 = sshll.u32 %s2687_s30, 4  ;;  %s607_s27 = scalar_lea.vmem %s3061_s8, %s2687_s30 }
  0x15   : > { %s2705_s15 = scalar_lea.vmem %s3077_s4, %s2224_s20  ;;  %s2710_s26 = scalar_lea.vmem %s3078_s5, %s2224_s20 }
  0x16   : > { %s2723_s23 = scalar_lea.vmem %s3062_s9, %s2224_s20  ;;  %s615_s4 = scalar_lea.vmem %s3063_s10, %s2687_s30 }
  0x17   : > { %s2227_s28 = sshll.u32 %s2687_s30, 6  ;;  %s623_s6 = scalar_lea.vmem %s3065_s12, %s2687_s30 }
  0x18   : > { %s2737_s17 = scalar_lea.vmem %s3064_s11, %s2227_s28  ;;  %629 = sbr.rel (%p2178_p5) target bundleno = 31 (0x1f), region = 76 }
  0x1d   : > { %v630_v0 = vld [vmem:[%s3053_s0] sm:$0xff]  ;;  %vm632_vm0 = vcmask 261120   ;;  %v631_v1 = vld [vmem:[%s3053_s0 + $0x8] sm:$0xff] }
  0x1e   : > { %633 = vst.msk [vmem:[#allocation2] sm:$0xff] %vm632_vm0, %v630_v0  ;;  %634 = vst.msk [vmem:[#allocation2 + $0x8] sm:$0xff] %vm632_vm0, %v631_v1 }
  0x1f PF: > { %vm639_vm1 = vcmask 261120   ;;  %v2466_v16 = vld [vmem:[%s2705_s15 + $0x8] sm:$0xff]   ;;  %v2576_v17 = vmov 0.0   ;;  %vm2577_vm2 = vmmov 0   ;;  %v2467_v18 = vld [vmem:[%s2705_s15] sm:$0xff]   ;;  %s3079_s22 = scalar_lea.vmem %s3055_s2, %s2687_s30  ;;  %s3080_s28 = scalar_lea.vmem %s3056_s3, %s2687_s30  ;;  %vm749_vm3 = vcmask 64512  }
  0x20   : > { %2278 = vmatprep.subr.bf16.mxu0 %v2576_v17  ;;  %2282 = vmatprep.mubr.msk.bf16.mxu0 %vm2577_vm2, %v2576_v17  ;;  %v2179_v27 = vld [vmem:[%s3079_s22] ss:$0 sm:$0xff]  ;;  %s2578_s29 = smov 88   ;;  %s2579_s13 = smov 96   ;;  %vm813_vm4 = vcmask 1043456   ;;  %vm972_vm5 = vcmask 130112  }
  0x21   : > { %2279 = vmatpush3.bf16.msra.mxu0 %v2466_v16  ;;  %2298 = vmatprep.subr.bf16.mxu1 %v2576_v17  ;;  %v2180_v31 = vld [vmem:[%s3080_s28] ss:$0 sm:$0xff]  ;;  %s2580_s16 = smov 120   ;;  %s2581_s19 = smov 112   ;;  %vm1088_vm6 = vcmask 195712   ;;  %vm1204_vm7 = vcmask 261312  }
  0x22   : > { %2280 = vmatprep.subr.bf16.mxu0 %v2576_v17  ;;  %2300 = vmatprep.mubr.msk.bf16.mxu1 %vm2577_vm2, %v2576_v17  ;;  %s2582_s20 = smov 80   ;;  %s2583_s18 = smov 104   ;;  %v744_v0 = vld [vmem:[%s3054_s1] sm:$0xff] }
  0x23   : > { %s2584_s21 = smov 72   ;;  %s2585_s22 = smov 56  }
  0x24   : > { %s2586_s24 = smov 64   ;;  %s2587_s14 = smov 48  }
  0x25   : > { %v2746_v2 = vld [vmem:[#allocation2] sm:$0xff]  ;;  %v2748_v3 = vld [vmem:[#allocation2 + $0x8] sm:$0xff]  ;;  %2281 = vmatpush3.bf16.msra.mxu0 %v2467_v18  ;;  %s2588_s28 = smov 40   ;;  %p2219_p6 = scmp.ne.s32.totalorder %s2566_s25, 2 }
  0x26   : > { %v640_v4 = vsel %vm639_vm1, %v2746_v2, 0.0  ;;  %v643_v5 = vsel %vm639_vm1, %v2748_v3, 0.0  ;;  %2286 = vmatprep.subr.bf16.mxu0 %v2576_v17 }
  0x27   : > { %641 = vadd.xlane.f32.xlu0 %v640_v4 }
  0x2b   : > { %644 = vadd.xlane.f32.xlu0 %v643_v5 }
  0xb0   : > { %v642_v6 = vpop.xlane.xlu0 %641 }
  0xb1   : > { %v647_v7 = vmul.f32 0.03125, %v642_v6 }
  0xb3   : > { %v649_v8 = vsub.f32 %v2746_v2, %v647_v7 }
  0xb4   : > { %v645_v9 = vpop.xlane.xlu0 %644 }
  0xb5   : > { %v648_v10 = vmul.f32 0.03125, %v645_v9  ;;  %v651_v11 = vmul.f32 %v649_v8, %v649_v8 }
  0xb7   : > { %v650_v12 = vsub.f32 %v2748_v3, %v648_v10  ;;  %v653_v13 = vsel %vm639_vm1, %v651_v11, 0.0 }
  0xb8   : > { %654 = vadd.xlane.f32.xlu1 %v653_v13 }
  0xb9   : > { %v652_v14 = vmul.f32 %v650_v12, %v650_v12 }
  0xbb   : > { %v656_v15 = vsel %vm639_vm1, %v652_v14, 0.0 }
  0xbc   : > { %657 = vadd.xlane.f32.xlu1 %v656_v15 }
 0x141   : > { %v655_v19 = vpop.xlane.xlu1 %654 }
 0x142   : > { %v659_v20 = vmul.f32 0.03125, %v655_v19 }
 0x144   : > { %v661_v21 = vadd.f32 1e-05, %v659_v20 }
 0x145   : > { %v658_v22 = vpop.xlane.xlu1 %657 }
 0x146   : > { %2480 = vrsqrt.f32 %v661_v21  ;;  %v660_v23 = vmul.f32 0.03125, %v658_v22 }
 0x148   : > { %v662_v24 = vadd.f32 1e-05, %v660_v23 }
 0x14a   : > { %2482 = vrsqrt.f32 %v662_v24 }
 0x153   : > { %v2481_v25 = vpop.eup %2480 }
 0x154   : > { %v665_v26 = vmul.f32 %v2481_v25, %v649_v8 }
 0x156   : > { %v673_v30 = vmul.f32 %v2179_v27, %v665_v26 }
 0x157   : > { %v2483_v28 = vpop.eup %2482 }
 0x158   : > { %v666_v29 = vmul.f32 %v2483_v28, %v650_v12  ;;  %v681_v33 = vadd.f32 %v2180_v31, %v673_v30 }
 0x15a   : > { %v674_v32 = vmul.f32 %v2179_v27, %v666_v29 }
 0x15c   : > { %v682_v34 = vadd.f32 %v2180_v31, %v674_v32 }
 0x15e   : > { %v683_v35 = vpack.c.bf16 %v682_v34, %v681_v33 }
 0x160   : > { %2283 = vmatmul.mubr.msk.bf16.vlgmr.msra.gmra.mxu0 %vm639_vm1, %v683_v35 }
 0x161   : > { %2288 = vmatprep.mubr.msk.bf16.mxu0 %vm2577_vm2, %v2576_v17 }
 0x220   : > { %v737_v36 = vpop.f32.mrf.mxu0 }
 0x221   : > { %v2781_v37 = vpack.c.bf16 %v737_v36, %v737_v36 }
 0x222   : > { %v2284_v38 = vpop.f32.mrf.mxu0 }
 0x223   : > { %860 = vrot.lane.b32.xlu1 %v2781_v37, %s2578_s29  ;;  %747 = vrot.lane.b32.xlu0 %v2781_v37, %s2579_s13 }
 0x224   : > { %v740_v39 = vpop.f32.mrf.mxu0 }
 0x225   : > { %v2789_v41 = vpack.c.bf16 %v740_v39, %v740_v39 }
 0x226   : > { %v2285_v40 = vpop.f32.mrf.mxu0 }
 0x227   : > { %858 = vrot.lane.b32.xlu1 %v2781_v37, %s2580_s16  ;;  %974 = vrot.lane.b32.xlu0 %v2781_v37, %s2581_s19 }
 0x22b   : > { %976 = vrot.lane.b32.xlu1 %v2781_v37, %s2582_s20  ;;  %1090 = vrot.lane.b32.xlu0 %v2781_v37, %s2583_s18 }
 0x22f   : > { %1092 = vrot.lane.b32.xlu1 %v2781_v37, %s2584_s21  ;;  %1319 = vrot.lane.b32.xlu0 %v2789_v41, %s2578_s29  ;;  %s2589_s29 = smov 8  }
 0x233   : > { %1434 = vrot.lane.b32.xlu0 %v2789_v41, %s2582_s20  ;;  %1208 = vrot.lane.b32.xlu1 %v2789_v41, %s2579_s13  ;;  %s2590_s13 = smov 16   ;;  %s3081_s20 = sld [smem:[#allocation12_spill]] }
 0x237   : > { %1549 = vrot.lane.b32.xlu0 %v2789_v41, %s2584_s21  ;;  %1317 = vrot.lane.b32.xlu1 %v2789_v41, %s2580_s16  ;;  %s2591_s16 = smov 24  }
 0x23b   : > { %1432 = vrot.lane.b32.xlu1 %v2789_v41, %s2581_s19 }
 0x23f   : > { %1547 = vrot.lane.b32.xlu1 %v2789_v41, %s2583_s18  ;;  %s3082_s18 = scalar_lea.vmem %s3081_s20, %s2687_s30 }
 0x295   : > { %v861_v42 = vpop.permute.xlu1 %860  ;;  %v748_v43 = vpop.permute.xlu0 %747 }
 0x296   : > { %v754_v44 = vsel %vm749_vm3, %v748_v43, 0  ;;  %v866_v45 = vsel %vm749_vm3, %v861_v42, 0 }
 0x297   : > { %2287 = vmatpush3.bf16.xpose.msra.mxu0 %v754_v44  ;;  %2299 = vmatpush3.bf16.xpose.msra.mxu1 %v866_v45 }
 0x298   : > { %2310 = vmatprep.subr.bf16.mxu1 %v2576_v17  ;;  %2292 = vmatprep.subr.bf16.mxu0 %v2576_v17 }
 0x299   : > { %v859_v46 = vpop.permute.xlu1 %858  ;;  %v975_v50 = vpop.permute.xlu0 %974 }
 0x29d   : > { %v977_v47 = vpop.permute.xlu1 %976  ;;  %v1091_v53 = vpop.permute.xlu0 %1090 }
 0x29e   : > { %v982_v48 = vsel %vm749_vm3, %v977_v47, 0  ;;  %2289 = vmatmul.mubr.msk.bf16.vlgmr.msra.gmra.mxu0 %vm749_vm3, %v2781_v37  ;;  %2301 = vmatmul.mubr.msk.bf16.vlgmr.msra.gmra.mxu1 %vm749_vm3, %v859_v46 }
 0x29f   : > { %2311 = vmatpush3.bf16.xpose.msra.mxu1 %v982_v48  ;;  %2312 = vmatprep.mubr.msk.bf16.mxu1 %vm2577_vm2, %v2576_v17 }
 0x2a0   : > { %2322 = vmatprep.subr.bf16.mxu1 %v2576_v17  ;;  %2294 = vmatprep.mubr.msk.bf16.mxu0 %vm2577_vm2, %v2576_v17 }
 0x2a1   : > { %v1093_v49 = vpop.permute.xlu1 %1092  ;;  %v1320_v55 = vpop.permute.xlu0 %1319 }
 0x2a2   : > { %v1098_v51 = vsel %vm749_vm3, %v1093_v49, 0  ;;  %v1325_v56 = vsel %vm749_vm3, %v1320_v55, 0 }
 0x2a5   : > { %v1209_v52 = vpop.permute.xlu1 %1208  ;;  %v1435_v57 = vpop.permute.xlu0 %1434 }
 0x2a6   : > { %2313 = vmatmul.mubr.msk.bf16.vlgmr.msra.gmra.mxu1 %vm749_vm3, %v975_v50  ;;  %v1214_v54 = vsel %vm749_vm3, %v1209_v52, 0  ;;  %v1440_v59 = vsel %vm749_vm3, %v1435_v57, 0 }
 0x2a7   : > { %2323 = vmatpush3.bf16.xpose.msra.mxu1 %v1098_v51  ;;  %2324 = vmatprep.mubr.msk.bf16.mxu1 %vm2577_vm2, %v2576_v17 }
 0x2a8   : > { %2334 = vmatprep.subr.bf16.mxu1 %v2576_v17 }
 0x2a9   : > { %v1318_v58 = vpop.permute.xlu1 %1317  ;;  %v1550_v60 = vpop.permute.xlu0 %1549 }
 0x2aa   : > { %v1555_v62 = vsel %vm749_vm3, %v1550_v60, 0 }
 0x2ad   : > { %v1433_v61 = vpop.permute.xlu1 %1432 }
 0x2ae   : > { %2325 = vmatmul.mubr.msk.bf16.vlgmr.msra.gmra.mxu1 %vm749_vm3, %v1091_v53 }
 0x2af   : > { %2335 = vmatpush3.bf16.xpose.msra.mxu1 %v1214_v54  ;;  %2336 = vmatprep.mubr.msk.bf16.mxu1 %vm2577_vm2, %v2576_v17 }
 0x2b0   : > { %2346 = vmatprep.subr.bf16.mxu1 %v2576_v17 }
 0x2b1   : > { %v1548_v63 = vpop.permute.xlu1 %1547 }
 0x2b6   : > { %2337 = vmatmul.mubr.msk.bf16.vlgmr.msra.gmra.mxu1 %vm749_vm3, %v2789_v41 }
 0x2b7   : > { %2347 = vmatpush3.bf16.xpose.msra.mxu1 %v1325_v56  ;;  %2348 = vmatprep.mubr.msk.bf16.mxu1 %vm2577_vm2, %v2576_v17 }
 0x2b8   : > { %2358 = vmatprep.subr.bf16.mxu1 %v2576_v17 }
 0x2be   : > { %2349 = vmatmul.mubr.msk.bf16.vlgmr.msra.gmra.mxu1 %vm749_vm3, %v1318_v58 }
 0x2bf   : > { %2359 = vmatpush3.bf16.xpose.msra.mxu1 %v1440_v59  ;;  %2360 = vmatprep.mubr.msk.bf16.mxu1 %vm2577_vm2, %v2576_v17 }
 0x2c0   : > { %2370 = vmatprep.subr.bf16.mxu1 %v2576_v17 }
 0x2c6   : > { %2361 = vmatmul.mubr.msk.bf16.vlgmr.msra.gmra.mxu1 %vm749_vm3, %v1433_v61 }
 0x2c7   : > { %2371 = vmatpush3.bf16.xpose.msra.mxu1 %v1555_v62  ;;  %2372 = vmatprep.mubr.msk.bf16.mxu1 %vm2577_vm2, %v2576_v17 }
 0x2c8   : > { %2382 = vmatprep.subr.bf16.mxu1 %v2576_v17 }
 0x2ce   : > { %2373 = vmatmul.mubr.msk.bf16.vlgmr.msra.gmra.mxu1 %vm749_vm3, %v1548_v63 }
 0x2cf   : > { %2386 = vmatprep.mubr.msk.bf16.mxu1 %vm2577_vm2, %v2576_v17 }
 0x35e   : > { %v790_v1 = vpop.f32.mrf.mxu0  ;;  %v902_v4 = vpop.f32.mrf.mxu1 }
 0x35f   : > { %v2844_v5 = vadd.f32 %v790_v1, %v744_v0  ;;  %v2846_v6 = vadd.f32 %v902_v4, %v744_v0 }
 0x360   : > { %v2290_v7 = vpop.f32.mrf.mxu0  ;;  %v2302_v8 = vpop.f32.mrf.mxu1 }
 0x361   : > { %v908_v9 = vsel %vm749_vm3, %v2846_v6, -inf  ;;  %v796_v10 = vsel %vm749_vm3, %v2844_v5, -inf }
 0x362   : > { %v905_v11 = vpop.f32.mrf.mxu1  ;;  %909 = vmax.xlane.f32.xlu1 %v908_v9  ;;  %797 = vmax.xlane.f32.xlu0 %v796_v10  ;;  %v793_v12 = vpop.f32.mrf.mxu0 }
 0x364   : > { %v2291_v13 = vpop.f32.mrf.mxu0  ;;  %v2303_v14 = vpop.f32.mrf.mxu1 }
 0x366   : > { %v1018_v15 = vpop.f32.mrf.mxu1 }
 0x367   : > { %v1019_v39 = vadd.f32 %v1018_v15, %v744_v0 }
 0x368   : > { %v2314_v16 = vpop.f32.mrf.mxu1 }
 0x369   : > { %v1024_v47 = vsel %vm749_vm3, %v1019_v39, -inf }
 0x36a   : > { %v1021_v18 = vpop.f32.mrf.mxu1 }
 0x36c   : > { %v2315_v19 = vpop.f32.mrf.mxu1 }
 0x36e   : > { %v1134_v20 = vpop.f32.mrf.mxu1 }
 0x36f   : > { %v1135_v44 = vadd.f32 %v1134_v20, %v744_v0 }
 0x370   : > { %v2326_v21 = vpop.f32.mrf.mxu1 }
 0x371   : > { %v1140_v50 = vsel %vm749_vm3, %v1135_v44, -inf }
 0x372   : > { %v1137_v22 = vpop.f32.mrf.mxu1 }
 0x373   : > { %920 = vrot.lane.b32.xlu1 %v2781_v37, %s2585_s22 }
 0x374   : > { %v2327_v23 = vpop.f32.mrf.mxu1 }
 0x376   : > { %v1250_v24 = vpop.f32.mrf.mxu1 }
 0x377   : > { %v1251_v48 = vadd.f32 %v1250_v24, %v744_v0 }
 0x378   : > { %v2338_v25 = vpop.f32.mrf.mxu1  ;;  %808 = vrot.lane.b32.xlu0 %v2781_v37, %s2586_s24 }
 0x379   : > { %v1256_v52 = vsel %vm749_vm3, %v1251_v48, -inf }
 0x37a   : > { %v1253_v26 = vpop.f32.mrf.mxu1 }
 0x37c   : > { %v2339_v27 = vpop.f32.mrf.mxu1 }
 0x37e   : > { %v1361_v28 = vpop.f32.mrf.mxu1 }
 0x37f   : > { %v1362_v40 = vadd.f32 %v1361_v28, %v744_v0 }
 0x380   : > { %v2350_v29 = vpop.f32.mrf.mxu1 }
 0x381   : > { %v1367_v46 = vsel %vm749_vm3, %v1362_v40, -inf }
 0x382   : > { %v1364_v30 = vpop.f32.mrf.mxu1 }
 0x384   : > { %v2351_v31 = vpop.f32.mrf.mxu1 }
 0x386   : > { %v1476_v32 = vpop.f32.mrf.mxu1 }
 0x387   : > { %v1477_v51 = vadd.f32 %v1476_v32, %v744_v0 }
 0x388   : > { %v2362_v33 = vpop.f32.mrf.mxu1 }
 0x389   : > { %v1482_v53 = vsel %vm749_vm3, %v1477_v51, -inf }
 0x38a   : > { %v1479_v34 = vpop.f32.mrf.mxu1 }
 0x38c   : > { %v2363_v35 = vpop.f32.mrf.mxu1 }
 0x38e   : > { %v1591_v36 = vpop.f32.mrf.mxu1 }
 0x38f   : > { %v2856_v45 = vadd.f32 %v1591_v36, %v744_v0 }
 0x390   : > { %v2374_v38 = vpop.f32.mrf.mxu1 }
 0x391   : > { %v1597_v49 = vsel %vm749_vm3, %v2856_v45, -inf }
 0x392   : > { %v1594_v42 = vpop.f32.mrf.mxu1 }
 0x394   : > { %v2375_v43 = vpop.f32.mrf.mxu1 }
 0x397   : > { %1368 = vmax.xlane.f32.xlu1 %v1367_v46  ;;  %1025 = vmax.xlane.f32.xlu0 %v1024_v47 }
 0x39b   : > { %1598 = vmax.xlane.f32.xlu1 %v1597_v49  ;;  %1141 = vmax.xlane.f32.xlu0 %v1140_v50 }
 0x39f   : > { %1257 = vmax.xlane.f32.xlu0 %v1256_v52 }
 0x3a3   : > { %1483 = vmax.xlane.f32.xlu0 %v1482_v53 }
 0x3b9   : > { %1036 = vrot.lane.b32.xlu0 %v2781_v37, %s2587_s14 }
 0x3eb   : > { %v910_v54 = vpop.xlane.xlu1 %909  ;;  %v798_v55 = vpop.xlane.xlu0 %797 }
 0x3ec   : > { %v911_v56 = vsub.f32 %v2846_v6, %v910_v54  ;;  %v799_v57 = vsub.f32 %v2844_v5, %v798_v55 }
 0x3ee   : > { %v912_v58 = vmul.f32 1.442695, %v911_v56  ;;  %v800_v59 = vmul.f32 1.442695, %v799_v57 }
 0x3ef   : > { %v809_v60 = vpop.permute.xlu0 %808  ;;  %v921_v5 = vpop.permute.xlu1 %920 }
 0x3f0   : > { %2484 = vpow2.f32 %v912_v58  ;;  %v815_v61 = vsel %vm813_vm4, %v809_v60, 0 }
 0x3f1   : > { %2486 = vpow2.f32 %v800_v59  ;;  %2293 = vmatpush3.bf16.msra.mxu0 %v815_v61 }
 0x3f2   : > { %2304 = vmatprep.subr.bf16.mxu0 %v2576_v17 }
 0x3fd   : > { %v2871_v62 = vpop.eup %2484 }
 0x3fe   : > { %v2487_v63 = vpop.eup %2486  ;;  %v914_v0 = vsel %vm749_vm3, %v2871_v62, 0.0 }
 0x3ff   : > { %915 = vadd.xlane.f32.xlu1 %v914_v0  ;;  %v802_v1 = vsel %vm749_vm3, %v2487_v63, 0.0 }
 0x400   : > { %803 = vadd.xlane.f32.xlu0 %v802_v1 }
 0x410   : > { %1268 = vrot.lane.b32.xlu1 %v2789_v41, %s2586_s24 }
 0x420   : > { %v1026_v4 = vpop.xlane.xlu0 %1025  ;;  %v1369_v9 = vpop.xlane.xlu1 %1368 }
 0x421   : > { %v1027_v6 = vsub.f32 %v1019_v39, %v1026_v4  ;;  %v1370_v12 = vsub.f32 %v1362_v40, %v1369_v9 }
 0x423   : > { %v1028_v7 = vmul.f32 1.442695, %v1027_v6  ;;  %v1371_v16 = vmul.f32 1.442695, %v1370_v12 }
 0x424   : > { %v1142_v8 = vpop.xlane.xlu0 %1141  ;;  %v1599_v29 = vpop.xlane.xlu1 %1598 }
 0x425   : > { %v1143_v10 = vsub.f32 %v1135_v44, %v1142_v8  ;;  %2488 = vpow2.f32 %v1028_v7  ;;  %v1600_v30 = vsub.f32 %v2856_v45, %v1599_v29  ;;  %v926_v44 = vsel %vm813_vm4, %v921_v5, 0 }
 0x427   : > { %v1144_v11 = vmul.f32 1.442695, %v1143_v10  ;;  %v1601_v31 = vmul.f32 1.442695, %v1600_v30 }
 0x428   : > { %v1258_v13 = vpop.xlane.xlu0 %1257 }
 0x429   : > { %v1259_v14 = vsub.f32 %v1251_v48, %v1258_v13  ;;  %2490 = vpow2.f32 %v1144_v11 }
 0x42b   : > { %v1260_v15 = vmul.f32 1.442695, %v1259_v14 }
 0x42c   : > { %v1484_v26 = vpop.xlane.xlu0 %1483 }
 0x42d   : > { %2492 = vpow2.f32 %v1260_v15  ;;  %v1485_v27 = vsub.f32 %v1477_v51, %v1484_v26 }
 0x42e   : > { %2494 = vpow2.f32 %v1371_v16 }
 0x42f   : > { %v1486_v28 = vmul.f32 1.442695, %v1485_v27 }
 0x430   : > { %v1037_v35 = vpop.permute.xlu0 %1036 }
 0x431   : > { %2496 = vpow2.f32 %v1486_v28  ;;  %v1042_v46 = vsel %vm813_vm4, %v1037_v35, 0 }
 0x432   : > { %v2489_v18 = vpop.eup %2488  ;;  %2498 = vpow2.f32 %v1601_v31 }
 0x433   : > { %v1030_v19 = vsel %vm749_vm3, %v2489_v18, 0.0 }
 0x434   : > { %1031 = vadd.xlane.f32.xlu0 %v1030_v19 }
 0x436   : > { %v2879_v20 = vpop.eup %2490 }
 0x437   : > { %v1146_v21 = vsel %vm749_vm3, %v2879_v20, 0.0 }
 0x438   : > { %1147 = vadd.xlane.f32.xlu1 %v1146_v21 }
 0x43a   : > { %v2883_v22 = vpop.eup %2492 }
 0x43b   : > { %v1262_v23 = vsel %vm749_vm3, %v2883_v22, 0.0  ;;  %v2887_v24 = vpop.eup %2494 }
 0x43c   : > { %1263 = vadd.xlane.f32.xlu1 %v1262_v23  ;;  %v1373_v25 = vsel %vm749_vm3, %v2887_v24, 0.0 }
 0x43e   : > { %v2895_v32 = vpop.eup %2496 }
 0x43f   : > { %v1488_v33 = vsel %vm749_vm3, %v2895_v32, 0.0  ;;  %v2899_v34 = vpop.eup %2498 }
 0x440   : > { %1374 = vadd.xlane.f32.xlu1 %v1373_v25 }
 0x44a   : > { %1152 = vrot.lane.b32.xlu0 %v2781_v37, %s2588_s28  ;;  %v1603_v37 = vsel %vm749_vm3, %v2899_v34, 0.0 }
 0x451   : > { %1379 = vrot.lane.b32.xlu1 %v2789_v41, %s2585_s22 }
 0x469   : > { %1489 = vadd.xlane.f32.xlu0 %v1488_v33 }
 0x475   : > { %1604 = vadd.xlane.f32.xlu1 %v1603_v37 }
 0x47f   : > { %1494 = vrot.lane.b32.xlu0 %v2789_v41, %s2587_s14 }
 0x486   : > { %1609 = vrot.lane.b32.xlu1 %v2789_v41, %s2588_s28 }
 0x488   : > { %v916_v38 = vpop.xlane.xlu1 %915 }
 0x489   : > { %v804_v36 = vpop.xlane.xlu0 %803 }
 0x48a   : > { %2500 = vrcp.f32 %v804_v36 }
 0x48b   : > { %2502 = vrcp.f32 %v916_v38 }
 0x48c   : > { %v1269_v47 = vpop.permute.xlu1 %1268 }
 0x48d   : > { %v1274_v61 = vsel %vm813_vm4, %v1269_v47, 0  ;;  %v2469_v47 = vld [vmem:[%s2710_s26] sm:$0xff]  }
 0x497   : > { %v2501_v39 = vpop.eup %2500 }
 0x498   : > { %v806_v40 = vmul.f32 %v2501_v39, %v2487_v63  ;;  %v2503_v43 = vpop.eup %2502 }
 0x499   : > { %v918_v41 = vmul.f32 %v2503_v43, %v2871_v62 }
 0x49a   : > { %v807_v42 = vpack.c.bf16 %v806_v40, %v806_v40 }
 0x49b   : > { %v919_v45 = vpack.c.bf16 %v918_v41, %v918_v41 }
 0x49c   : > { %2295 = vmatmul.mubr.msk.bf16.vlgmr.msra.gmra.mxu0 %vm749_vm3, %v807_v42 }
 0x49d   : > { %2305 = vmatpush3.bf16.msra.mxu0 %v926_v44  ;;  %2306 = vmatprep.mubr.msk.bf16.mxu0 %vm2577_vm2, %v2576_v17 }
 0x49e   : > { %2316 = vmatprep.subr.bf16.mxu0 %v2576_v17 }
 0x4a4   : > { %2307 = vmatmul.mubr.msk.bf16.vlgmr.msra.gmra.mxu0 %vm749_vm3, %v919_v45  ;;  %v2468_v45 = vld [vmem:[%s2710_s26 + $0x8] sm:$0xff]  }
 0x4a5   : > { %2317 = vmatpush3.bf16.msra.mxu0 %v1042_v46  ;;  %2318 = vmatprep.mubr.msk.bf16.mxu0 %vm2577_vm2, %v2576_v17 }
 0x4a6   : > { %2328 = vmatprep.subr.bf16.mxu0 %v2576_v17  ;;  %2383 = vmatpush3.bf16.msra.mxu1 %v2468_v45  ;;  %v2477_v45 = vld [vmem:[%s2737_s17 + $0x10] sm:$0xff]  }
 0x4a7   : > { %2384 = vmatprep.subr.bf16.mxu1 %v2576_v17 }
 0x4aa   : > { %2385 = vmatpush3.bf16.msra.mxu1 %v2469_v47  ;;  %v2479_v47 = vld [vmem:[%s2737_s17] sm:$0xff]  }
 0x4ab   : > { %2398 = vmatprep.subr.bf16.mxu1 %v2576_v17 }
 0x4bd   : > { %v1032_v48 = vpop.xlane.xlu0 %1031 }
 0x4be   : > { %2504 = vrcp.f32 %v1032_v48 }
 0x4c1   : > { %v1148_v49 = vpop.xlane.xlu1 %1147  ;;  %v1153_v53 = vpop.permute.xlu0 %1152 }
 0x4c2   : > { %2506 = vrcp.f32 %v1148_v49  ;;  %v1158_v57 = vsel %vm813_vm4, %v1153_v53, 0 }
 0x4c5   : > { %v1264_v50 = vpop.xlane.xlu1 %1263 }
 0x4c6   : > { %2508 = vrcp.f32 %v1264_v50 }
 0x4c9   : > { %v1375_v56 = vpop.xlane.xlu1 %1374 }
 0x4ca   : > { %2510 = vrcp.f32 %v1375_v56 }
 0x4cb   : > { %v2505_v51 = vpop.eup %2504 }
 0x4cc   : > { %v1034_v52 = vmul.f32 %v2505_v51, %v2489_v18 }
 0x4cd   : > { %v1380_v63 = vpop.permute.xlu1 %1379 }
 0x4ce   : > { %v1035_v54 = vpack.c.bf16 %v1034_v52, %v1034_v52  ;;  %v1385_v4 = vsel %vm813_vm4, %v1380_v63, 0  ;;  %v2200_v63 = vld [vmem:[%s3082_s18] ss:$0 sm:$0xff] }
 0x4cf   : > { %v2507_v55 = vpop.eup %2506 }
 0x4d0   : > { %2319 = vmatmul.mubr.msk.bf16.vlgmr.msra.gmra.mxu0 %vm749_vm3, %v1035_v54  ;;  %v1150_v58 = vmul.f32 %v2507_v55, %v2879_v20 }
 0x4d1   : > { %2329 = vmatpush3.bf16.msra.mxu0 %v1158_v57  ;;  %2330 = vmatprep.mubr.msk.bf16.mxu0 %vm2577_vm2, %v2576_v17 }
 0x4d2   : > { %2340 = vmatprep.subr.bf16.mxu0 %v2576_v17  ;;  %v1151_v59 = vpack.c.bf16 %v1150_v58, %v1150_v58 }
 0x4d3   : > { %v2509_v60 = vpop.eup %2508 }
 0x4d4   : > { %v1266_v62 = vmul.f32 %v2509_v60, %v2883_v22 }
 0x4d6   : > { %v1267_v0 = vpack.c.bf16 %v1266_v62, %v1266_v62 }
 0x4d7   : > { %v2511_v1 = vpop.eup %2510 }
 0x4d8   : > { %2331 = vmatmul.mubr.msk.bf16.vlgmr.msra.gmra.mxu0 %vm749_vm3, %v1151_v59  ;;  %v1377_v5 = vmul.f32 %v2511_v1, %v2887_v24 }
 0x4d9   : > { %2341 = vmatpush3.bf16.msra.mxu0 %v1274_v61  ;;  %2342 = vmatprep.mubr.msk.bf16.mxu0 %vm2577_vm2, %v2576_v17 }
 0x4da   : > { %2352 = vmatprep.subr.bf16.mxu0 %v2576_v17  ;;  %v1378_v6 = vpack.c.bf16 %v1377_v5, %v1377_v5 }
 0x4e0   : > { %2343 = vmatmul.mubr.msk.bf16.vlgmr.msra.gmra.mxu0 %vm749_vm3, %v1267_v0 }
 0x4e1   : > { %2353 = vmatpush3.bf16.msra.mxu0 %v1385_v4  ;;  %2354 = vmatprep.mubr.msk.bf16.mxu0 %vm2577_vm2, %v2576_v17 }
 0x4e2   : > { %2364 = vmatprep.subr.bf16.mxu0 %v2576_v17 }
 0x4e8   : > { %2355 = vmatmul.mubr.msk.bf16.vlgmr.msra.gmra.mxu0 %vm749_vm3, %v1378_v6 }
 0x4e9   : > { %2366 = vmatprep.mubr.msk.bf16.mxu0 %vm2577_vm2, %v2576_v17 }
 0x4f2   : > { %v1490_v7 = vpop.xlane.xlu0 %1489 }
 0x4f3   : > { %2512 = vrcp.f32 %v1490_v7 }
 0x4f6   : > { %v1495_v8 = vpop.permute.xlu0 %1494 }
 0x4f7   : > { %v1500_v9 = vsel %vm813_vm4, %v1495_v8, 0 }
 0x4f8   : > { %2365 = vmatpush3.bf16.msra.mxu0 %v1500_v9 }
 0x4f9   : > { %2376 = vmatprep.subr.bf16.mxu0 %v2576_v17 }
 0x4fe   : > { %v1605_v10 = vpop.xlane.xlu1 %1604 }
 0x4ff   : > { %2514 = vrcp.f32 %v1605_v10 }
 0x500   : > { %v2513_v11 = vpop.eup %2512 }
 0x501   : > { %v1492_v12 = vmul.f32 %v2513_v11, %v2895_v32 }
 0x502   : > { %v1610_v13 = vpop.permute.xlu1 %1609 }
 0x503   : > { %v1615_v14 = vsel %vm813_vm4, %v1610_v13, 0  ;;  %v1493_v15 = vpack.c.bf16 %v1492_v12, %v1492_v12 }
 0x505   : > { %2367 = vmatmul.mubr.msk.bf16.vlgmr.msra.gmra.mxu0 %vm749_vm3, %v1493_v15 }
 0x506   : > { %2377 = vmatpush3.bf16.msra.mxu0 %v1615_v14  ;;  %2378 = vmatprep.mubr.msk.bf16.mxu0 %vm2577_vm2, %v2576_v17 }
 0x507   : > { %2390 = vmatprep.subr.bf16.mxu0 %v2576_v17 }
 0x50c   : > { %v2515_v16 = vpop.eup %2514 }
 0x50d   : > { %v1607_v18 = vmul.f32 %v2515_v16, %v2899_v34 }
 0x50f   : > { %v1608_v19 = vpack.c.bf16 %v1607_v18, %v1607_v18 }
 0x511   : > { %2379 = vmatmul.mubr.msk.bf16.vlgmr.msra.gmra.mxu0 %vm749_vm3, %v1608_v19 }
 0x512   : > { %2394 = vmatprep.mubr.msk.bf16.mxu0 %vm2577_vm2, %v2576_v17 }
 0x55c   : > { %v851_v20 = vpop.f32.mrf.mxu0 }
 0x55d   : > { %857 = vst.msk [vmem:[#allocation3] sm:$0xff] %vm749_vm3, %v851_v20 }
 0x55e   : > { %v2296_v21 = vpop.f32.mrf.mxu0 }
 0x55f   : > { %v2470_v21 = vld [vmem:[%s2723_s23 + $0x8] sm:$0xff]  }
 0x560   : > { %v854_v22 = vpop.f32.mrf.mxu0  ;;  %2391 = vmatpush3.bf16.msra.mxu0 %v2470_v21 }
 0x561   : > { %v2471_v22 = vld [vmem:[%s2723_s23] sm:$0xff]   ;;  %2392 = vmatprep.subr.bf16.mxu0 %v2576_v17  ;;  %s3083_s23 = scalar_lea.vmem %s3060_s7, %s2687_s30 }
 0x562   : > { %v2297_v23 = vpop.f32.mrf.mxu0 }
 0x564   : > { %v962_v24 = vpop.f32.mrf.mxu0  ;;  %2393 = vmatpush3.bf16.msra.mxu0 %v2471_v22 }
 0x565   : > { %969 = vrot.lane.b32.xlu0 %v962_v24, %s2589_s29 }
 0x566   : > { %v2308_v25 = vpop.f32.mrf.mxu0 }
 0x568   : > { %v965_v26 = vpop.f32.mrf.mxu0 }
 0x56a   : > { %v2309_v27 = vpop.f32.mrf.mxu0 }
 0x590   : > { %v1078_v28 = vpop.f32.mrf.mxu0 }
 0x591   : > { %1085 = vrot.lane.b32.xlu0 %v1078_v28, %s2590_s13 }
 0x592   : > { %v2320_v29 = vpop.f32.mrf.mxu0 }
 0x594   : > { %v1081_v30 = vpop.f32.mrf.mxu0 }
 0x596   : > { %v2321_v31 = vpop.f32.mrf.mxu0 }
 0x597   : > { %v2204_v31 = vld [vmem:[%s3083_s23] ss:$0 sm:$0xff] }
 0x598   : > { %v1194_v32 = vpop.f32.mrf.mxu0 }
 0x599   : > { %1201 = vrot.lane.b32.xlu0 %v1194_v32, %s2591_s16 }
 0x59a   : > { %v2332_v33 = vpop.f32.mrf.mxu0 }
 0x59c   : > { %v1197_v34 = vpop.f32.mrf.mxu0 }
 0x59e   : > { %v2333_v37 = vpop.f32.mrf.mxu0 }
 0x59f   : > { %v2205_v37 = vld [vmem:[%s607_s27] ss:$0 sm:$0xff] }
 0x5a0   : > { %v1310_v35 = vpop.f32.mrf.mxu0 }
 0x5a1   : > { %1316 = vst.msk [vmem:[#allocation3 + $0x8] sm:$0xff] %vm749_vm3, %v1310_v35 }
 0x5a2   : > { %v2344_v36 = vpop.f32.mrf.mxu0 }
 0x5a4   : > { %v1313_v38 = vpop.f32.mrf.mxu0 }
 0x5a6   : > { %v2345_v39 = vpop.f32.mrf.mxu0 }
 0x5a8   : > { %v1421_v40 = vpop.f32.mrf.mxu0 }
 0x5a9   : > { %1428 = vrot.lane.b32.xlu1 %v1421_v40, %s2589_s29  ;;  %v2472_v40 = vld [vmem:[%s2737_s17 + $0x38] sm:$0xff]  }
 0x5aa   : > { %v2356_v42 = vpop.f32.mrf.mxu0 }
 0x5ab   : > { %v2473_v42 = vld [vmem:[%s2737_s17 + $0x30] sm:$0xff]  }
 0x5ac   : > { %v1424_v43 = vpop.f32.mrf.mxu0 }
 0x5ad   : > { %v2474_v43 = vld [vmem:[%s2737_s17 + $0x28] sm:$0xff]  }
 0x5ae   : > { %v2357_v44 = vpop.f32.mrf.mxu0 }
 0x5af   : > { %v2475_v44 = vld [vmem:[%s2737_s17 + $0x20] sm:$0xff]  }
 0x5c5   : > { %v1536_v41 = vpop.f32.mrf.mxu0 }
 0x5c6   : > { %1543 = vrot.lane.b32.xlu1 %v1536_v41, %s2590_s13  ;;  %v2476_v41 = vld [vmem:[%s2737_s17 + $0x18] sm:$0xff]  }
 0x5c7   : > { %v2368_v46 = vpop.f32.mrf.mxu0 }
 0x5c8   : > { %v2478_v46 = vld [vmem:[%s2737_s17 + $0x8] sm:$0xff]  }
 0x5c9   : > { %v1539_v48 = vpop.f32.mrf.mxu0 }
 0x5ca   : > { %v2206_v48 = vld [vmem:[%s615_s4] ss:$0 sm:$0xff] }
 0x5cb   : > { %v2369_v49 = vpop.f32.mrf.mxu0 }
 0x5d1   : > { %v1651_v50 = vpop.f32.mrf.mxu0 }
 0x5d2   : > { %1658 = vrot.lane.b32.xlu1 %v1651_v50, %s2591_s16 }
 0x5d3   : > { %v2380_v51 = vpop.f32.mrf.mxu0 }
 0x5d5   : > { %v1654_v52 = vpop.f32.mrf.mxu0 }
 0x5d7   : > { %v970_v53 = vpop.permute.xlu0 %969  ;;  %v2381_v54 = vpop.f32.mrf.mxu0 }
 0x5d8   : > { %973 = vst.msk [vmem:[#allocation3] sm:$0xff] %vm972_vm5, %v970_v53 }
 0x603   : > { %v1086_v55 = vpop.permute.xlu0 %1085 }
 0x604   : > { %1089 = vst.msk [vmem:[#allocation3] sm:$0xff] %vm1088_vm6, %v1086_v55 }
 0x60b   : > { %v1202_v56 = vpop.permute.xlu0 %1201 }
 0x60c   : > { %1205 = vst.msk [vmem:[#allocation3] sm:$0xff] %vm1204_vm7, %v1202_v56 }
 0x613   : > { %v1662_v60 = vld [vmem:[#allocation3] sm:$0xff] }
 0x61b   : > { %v1429_v57 = vpop.permute.xlu1 %1428 }
 0x61c   : > { %1431 = vst.msk [vmem:[#allocation3 + $0x8] sm:$0xff] %vm972_vm5, %v1429_v57 }
 0x638   : > { %v1544_v58 = vpop.permute.xlu1 %1543 }
 0x639   : > { %1546 = vst.msk [vmem:[#allocation3 + $0x8] sm:$0xff] %vm1088_vm6, %v1544_v58 }
 0x644   : > { %v1659_v59 = vpop.permute.xlu1 %1658 }
 0x645   : > { %1661 = vst.msk [vmem:[#allocation3 + $0x8] sm:$0xff] %vm1204_vm7, %v1659_v59 }
 0x64c   : > { %v1663_v61 = vld [vmem:[#allocation3 + $0x8] sm:$0xff] }
 0x64d   : > { %v1664_v62 = vpack.c.bf16 %v1663_v61, %v1662_v60 }
 0x64f   : > { %2387 = vmatmul.mubr.msk.bf16.vlgmr.msra.gmra.mxu1 %vm639_vm1, %v1664_v62 }
 0x650   : > { %2414 = vmatprep.mubr.msk.bf16.mxu1 %vm2577_vm2, %v2576_v17  ;;  %2399 = vmatpush3.bf16.msra.mxu1 %v2472_v40 }
 0x651   : > { %2400 = vmatprep.subr.bf16.mxu1 %v2576_v17 }
 0x654   : > { %2401 = vmatpush3.bf16.msra.mxu1 %v2473_v42 }
 0x655   : > { %2402 = vmatprep.subr.bf16.mxu1 %v2576_v17 }
 0x658   : > { %2403 = vmatpush3.bf16.msra.mxu1 %v2474_v43 }
 0x659   : > { %2404 = vmatprep.subr.bf16.mxu1 %v2576_v17 }
 0x65c   : > { %2405 = vmatpush3.bf16.msra.mxu1 %v2475_v44 }
 0x65d   : > { %2406 = vmatprep.subr.bf16.mxu1 %v2576_v17 }
 0x660   : > { %2407 = vmatpush3.bf16.msra.mxu1 %v2476_v41 }
 0x661   : > { %2408 = vmatprep.subr.bf16.mxu1 %v2576_v17 }
 0x664   : > { %2409 = vmatpush3.bf16.msra.mxu1 %v2477_v45 }
 0x665   : > { %2410 = vmatprep.subr.bf16.mxu1 %v2576_v17 }
 0x668   : > { %2411 = vmatpush3.bf16.msra.mxu1 %v2478_v46 }
 0x669   : > { %2412 = vmatprep.subr.bf16.mxu1 %v2576_v17 }
 0x66c   : > { %2413 = vmatpush3.bf16.msra.mxu1 %v2479_v47 }
 0x70f   : > { %v1725_v0 = vpop.f32.mrf.mxu1 }
 0x710   : > { %v1726_v1 = vadd.f32 %v2200_v63, %v1725_v0 }
 0x711   : > { %v2388_v4 = vpop.f32.mrf.mxu1 }
 0x712   : > { %v2967_v5 = vadd.f32 %v1726_v1, %v2746_v2 }
 0x713   : > { %v1728_v6 = vpop.f32.mrf.mxu1 }
 0x714   : > { %v1729_v7 = vadd.f32 %v2200_v63, %v1728_v6  ;;  %v1736_v8 = vsel %vm639_vm1, %v2967_v5, 0.0 }
 0x715   : > { %1737 = vadd.xlane.f32.xlu0 %v1736_v8  ;;  %v2389_v9 = vpop.f32.mrf.mxu1 }
 0x716   : > { %v2972_v10 = vadd.f32 %v1729_v7, %v2748_v3 }
 0x718   : > { %v1739_v11 = vsel %vm639_vm1, %v2972_v10, 0.0 }
 0x719   : > { %1740 = vadd.xlane.f32.xlu1 %v1739_v11 }
 0x79e   : > { %v1738_v12 = vpop.xlane.xlu0 %1737 }
 0x79f   : > { %v1742_v13 = vmul.f32 0.03125, %v1738_v12 }
 0x7a1   : > { %v1744_v2 = vsub.f32 %v2967_v5, %v1742_v13  ;;  %v2210_v13 = vld [vmem:[%s623_s6] ss:$0 sm:$0xff] }
 0x7a2   : > { %v1741_v14 = vpop.xlane.xlu1 %1740 }
 0x7a3   : > { %v1743_v15 = vmul.f32 0.03125, %v1741_v14  ;;  %v1746_v16 = vmul.f32 %v1744_v2, %v1744_v2 }
 0x7a5   : > { %v1745_v18 = vsub.f32 %v2972_v10, %v1743_v15  ;;  %v1748_v19 = vsel %vm639_vm1, %v1746_v16, 0.0 }
 0x7a6   : > { %1749 = vadd.xlane.f32.xlu0 %v1748_v19 }
 0x7a7   : > { %v1747_v20 = vmul.f32 %v1745_v18, %v1745_v18 }
 0x7a9   : > { %v1751_v3 = vsel %vm639_vm1, %v1747_v20, 0.0 }
 0x7aa   : > { %1752 = vadd.xlane.f32.xlu0 %v1751_v3 }
 0x82f   : > { %v1750_v23 = vpop.xlane.xlu0 %1749 }
 0x830   : > { %v1754_v24 = vmul.f32 0.03125, %v1750_v23 }
 0x832   : > { %v1756_v25 = vadd.f32 1e-05, %v1754_v24 }
 0x833   : > { %v1753_v26 = vpop.xlane.xlu0 %1752 }
 0x834   : > { %2516 = vrsqrt.f32 %v1756_v25  ;;  %v1755_v27 = vmul.f32 0.03125, %v1753_v26 }
 0x836   : > { %v1757_v28 = vadd.f32 1e-05, %v1755_v27 }
 0x838   : > { %2518 = vrsqrt.f32 %v1757_v28 }
 0x841   : > { %v2517_v29 = vpop.eup %2516 }
 0x842   : > { %v1760_v30 = vmul.f32 %v2517_v29, %v1744_v2 }
 0x844   : > { %v1768_v34 = vmul.f32 %v2204_v31, %v1760_v30 }
 0x845   : > { %v2519_v32 = vpop.eup %2518 }
 0x846   : > { %v1761_v33 = vmul.f32 %v2519_v32, %v1745_v18  ;;  %v1776_v36 = vadd.f32 %v2205_v37, %v1768_v34 }
 0x848   : > { %v1769_v35 = vmul.f32 %v2204_v31, %v1761_v33 }
 0x84a   : > { %v1777_v38 = vadd.f32 %v2205_v37, %v1769_v35 }
 0x84c   : > { %v1778_v39 = vpack.c.bf16 %v1777_v38, %v1776_v36 }
 0x84e   : > { %2395 = vmatmul.mubr.msk.bf16.vlgmr.msra.gmra.mxu0 %vm639_vm1, %v1778_v39 }
 0x90e   : > { %v1839_v49 = vpop.f32.mrf.mxu0 }
 0x90f   : > { %v1840_v50 = vadd.f32 %v2206_v48, %v1839_v49 }
 0x910   : > { %v2396_v51 = vpop.f32.mrf.mxu0 }
 0x911   : > { %v1848_v52 = vmul.f32 0.044715, %v1840_v50  ;;  %v1846_v6 = vmul.f32 0.5, %v1840_v50 }
 0x912   : > { %v1842_v53 = vpop.f32.mrf.mxu0 }
 0x913   : > { %v1850_v54 = vmul.f32 %v1848_v52, %v1840_v50  ;;  %v1843_v55 = vadd.f32 %v2206_v48, %v1842_v53 }
 0x914   : > { %v2397_v56 = vpop.f32.mrf.mxu0 }
 0x915   : > { %v1852_v57 = vmul.f32 %v1850_v54, %v1840_v50  ;;  %v1849_v58 = vmul.f32 0.044715, %v1843_v55  ;;  %v1847_v7 = vmul.f32 0.5, %v1843_v55 }
 0x917   : > { %v1854_v59 = vadd.f32 %v1852_v57, %v1840_v50  ;;  %v1851_v60 = vmul.f32 %v1849_v58, %v1843_v55 }
 0x919   : > { %v1856_v61 = vmul.f32 0.7978846, %v1854_v59  ;;  %v1853_v17 = vmul.f32 %v1851_v60, %v1843_v55 }
 0x91b   : > { %2520 = vtanh.f32 %v1856_v61  ;;  %v1855_v62 = vadd.f32 %v1853_v17, %v1843_v55 }
 0x91d   : > { %v1857_v63 = vmul.f32 0.7978846, %v1855_v62 }
 0x91f   : > { %2522 = vtanh.f32 %v1857_v63 }
 0x928   : > { %v2521_v0 = vpop.eup %2520 }
 0x929   : > { %v1860_v1 = vadd.f32 1.0, %v2521_v0 }
 0x92b   : > { %v1862_v9 = vmul.f32 %v1860_v1, %v1846_v6 }
 0x92c   : > { %v2523_v4 = vpop.eup %2522 }
 0x92d   : > { %v1861_v8 = vadd.f32 1.0, %v2523_v4 }
 0x92f   : > { %v1863_v11 = vmul.f32 %v1861_v8, %v1847_v7 }
 0x931   : > { %v1864_v12 = vpack.c.bf16 %v1863_v11, %v1862_v9 }
 0x933   : > { %2415 = vmatmul.mubr.bf16.vlgmr.msra.gmra.mxu1 %v1864_v12 }
 0x9f3   : > { %v1970_v2 = vpop.f32.mrf.mxu1 }
 0x9f4   : > { %v1971_v14 = vadd.f32 %v2210_v13, %v1970_v2 }
 0x9f5   : > { %v2416_v15 = vpop.f32.mrf.mxu1 }
 0x9f6   : > { %v1977_v16 = vadd.f32 %v1971_v14, %v2967_v5 }
 0x9f7   : > { %v1973_v18 = vpop.f32.mrf.mxu1 }
 0x9f8   : > { %1979 = vst.msk [vmem:[#allocation2] sm:$0xff] %vm639_vm1, %v1977_v16  ;;  %v1974_v19 = vadd.f32 %v2210_v13, %v1973_v18  ;;  %1984 = sbr.rel (%p2219_p6) target bundleno = 2565 (0xa05), region = 80 }
 0x9f9   : > { %v2417_v20 = vpop.f32.mrf.mxu1 }
 0x9fa   : > { %v1978_v3 = vadd.f32 %v1974_v19, %v2972_v10 }
 0x9fc   : > { %1980 = vst.msk [vmem:[#allocation2 + $0x8] sm:$0xff] %vm639_vm1, %v1978_v3 }
 0x9ff   : > { %v1985_v21 = vld [vmem:[#allocation2] sm:$0xff] }
 0xa00   : > { %1987 = vst.msk [vmem:[#allocation4] sm:$0xff] %vm639_vm1, %v1985_v21 }
 0xa03   : > { %v1986_v22 = vld [vmem:[#allocation2 + $0x8] sm:$0xff] }
 0xa04   : > { %1988 = vst.msk [vmem:[#allocation4 + $0x8] sm:$0xff] %vm639_vm1, %v1986_v22 }
 0xa05 PF: > { %s3084_s6 = sld [smem:[#allocation8_spill]]  ;;  %s2592_s28 = smov [#allocation4]  }
 0xa06   : > { %s1998_s13 = sshll.u32 %s2592_s28, 4  ;;  %s1999_s13 = int_to_ptr.vmem [resolvable:$true] %s1998_s13 }
 0xa07   : > { %s2524_s16 = scalar_lea.vmem %s1999_s13, 256  ;;  %p2531_p11 = scmp.lt.s32.totalorder %s1999_s13, %s1999_s13 }
 0xa08   : > { %p2525_p8 = scmp.ne.s32.totalorder %s1999_s13, %s2524_s16  ;;  %p2532_p12 = scmp.lt.s32.totalorder %s2524_s16, %s2524_s16 }
 0xa0a   : > { %p2533_p13 = por %p2532_p12, %p2531_p11 }
 0xa0b   : > { %s3085_s30 = sadd.s32 4294967295, %s3084_s6  }
 0xa0c   : > { %p3028_p7 = scmp.eq.s32.totalorder %s3085_s30, 2 }
 0xa0e   : > { %p2526_p9 = pnand %p2525_p8, %p3028_p7 }
 0xa10   : > { %p2527_p10 = pneg %p2526_p9 }
 0xa12   : > { %p2534_p0 = pnand %p2533_p13, %p2527_p10 }
 0xa14   : > { %2537 = shalt.err (!%p2534_p0)
}
 0xa15   : > { %s2593_s25 = smov 128   ;;  %s3087_s20 = sld [smem:[#allocation13_spill]] }
 0xa1b   : > { %2419 = dma.vmem_to_hbm [thread:$0]  (%p3028_p7), %s1999_s13, 256, %s3087_s20, [#allocation5], %s2593_s25, %s2593_s25, %s2589_s29  }
 0xa1c   : > { %2561 = dma.done.wait (%p3028_p7), [#allocation5], 256  }
 0xa1d   : > { %2563 = vsyncadd (%p3028_p7), [#allocation5], 4294967040 }
 0xa1e PF: > { %s3088_s18 = sld [smem:[#allocation8_spill]] }
 0xa1f   : > { %s3089_s25 = sld [smem:[#allocation7_spill]] }
 0xa20   : > { %s3090_s26 = sld [smem:[#allocation9_spill]] }
 0xa24   : > { %s24_s27 = sadd.s32 1, %s3088_s18  }
 0xa25   : > { %p21_p1 = scmp.ge.s32.totalorder %s24_s27, 5  }
 0xa27   :  { %23 = sbr.rel (!%p21_p1) target bundleno = 7 (0x7), region = 141 }
 0xa2c   :  { %2014 = vsyncpa [#allocation5], 1 }
 0xa2d   :  { %2016 = vsyncpa [#allocation5 + $0x1], 1 }

</bundles_post_ra>
